<compile_context>
chip_gen: v7x
topology: tpu7x:2x2x1
jax: 0.10.0
libtpu: 0.0.40
codegen_flags: <defaults>
</compile_context>

<pallas_src>
import functools
import math

import jax
import jax.numpy as jnp
from jax.experimental import pallas as pl
from jax.experimental.pallas import tpu as pltpu


# ------------------------------ fused kernel -------------------------------

def _decoder_layer_kernel(
    # per-batch data blocks
    x_ref, mem_ref, smask_ref, cmask_ref,
    # self-attention params (fused qkv weight, out-proj)
    w_self_ref, fcs_w_ref, fcs_b_ref,
    # encoder-decoder attention params (q weight, fused kv weight, out-proj)
    wq_enc_ref, wkv_enc_ref, fce_w_ref, fce_b_ref,
    # feed-forward params
    w1_ref, b1_ref, w2_ref, b2_ref,
    # layernorm params
    ln1g_ref, ln1b_ref, ln2g_ref, ln2b_ref, ln3g_ref, ln3b_ref,
    # output + scratch
    out_ref, attn_scratch,
    *, num_heads):
    D = out_ref.shape[-1]
    dh = D // num_heads

    x0 = x_ref[0]          # (Lq, D)
    mem = mem_ref[0]       # (Ls, D)
    smask = smask_ref[0]   # (Lq, Lq) int32, nonzero = masked
    cmask = cmask_ref[0]   # (1, Ls)  int32, nonzero = masked

    def layernorm(s, g_ref, b_ref):
        mu = jnp.mean(s, axis=-1, keepdims=True)
        var = jnp.mean(jnp.square(s - mu), axis=-1, keepdims=True)
        return (s - mu) * jax.lax.rsqrt(var + 1e-5) * g_ref[...] + b_ref[...]

    def softmax_rows(s):
        s = s - jnp.max(s, axis=-1, keepdims=True)
        p = jnp.exp(s)
        return p * pl.reciprocal(jnp.sum(p, axis=-1, keepdims=True), approx=True)

    def mha(q2, k2, v2, mask2d):
        # q2: (Lq, D) with 1/sqrt(dh) pre-folded into the q projection weights
        # k2/v2: (Lkv, D); mask2d broadcastable to (Lq, Lkv)
        for h in range(num_heads):
            c0, c1 = h * dh, (h + 1) * dh
            # contract last dims directly (no materialized k.T)
            s = jax.lax.dot_general(
                q2[:, c0:c1], k2[:, c0:c1],
                (((1,), (1,)), ((), ())),
                preferred_element_type=jnp.float32)            # (Lq, Lkv)
            # masked_fill_(mask, -inf): large finite value gives identical
            # softmax for non-degenerate rows, no NaN for fully-masked rows.
            s = jnp.where(mask2d != 0, -1e30, s)
            p = softmax_rows(s)                                 # dropout: identity
            attn_scratch[:, c0:c1] = jnp.dot(
                p, v2[:, c0:c1], preferred_element_type=jnp.float32)
        return attn_scratch[...]                                # (Lq, D)

    # --- self-attention (single fused QKV matmul, q columns pre-scaled) ---
    qkv = jnp.dot(x0, w_self_ref[...], preferred_element_type=jnp.float32)
    sa = mha(qkv[:, :D], qkv[:, D:2 * D], qkv[:, 2 * D:], smask)
    sa = jnp.dot(sa, fcs_w_ref[...],
                 preferred_element_type=jnp.float32) + fcs_b_ref[...]
    x1 = layernorm(x0 + sa, ln1g_ref, ln1b_ref)

    # --- encoder-decoder attention (fused KV matmul on memory) ---
    q = jnp.dot(x1, wq_enc_ref[...], preferred_element_type=jnp.float32)
    kv = jnp.dot(mem, wkv_enc_ref[...], preferred_element_type=jnp.float32)
    ca = mha(q, kv[:, :D], kv[:, D:], cmask)
    ca = jnp.dot(ca, fce_w_ref[...],
                 preferred_element_type=jnp.float32) + fce_b_ref[...]
    x2 = layernorm(x1 + ca, ln2g_ref, ln2b_ref)

    # --- feed-forward ---
    h1 = jnp.dot(x2, w1_ref[...], preferred_element_type=jnp.float32) + b1_ref[...]
    h1 = jnp.maximum(h1, 0.0)
    ff = jnp.dot(h1, w2_ref[...], preferred_element_type=jnp.float32) + b2_ref[...]
    out_ref[0] = layernorm(x2 + ff, ln3g_ref, ln3b_ref)


# ------------------------- module-level composition -------------------------

def decoder_layer(tgt, memory, src_padding_mask, tgt_padding_mask,
                  tgt_subsequent_mask, params):
    Lq, B, D = tgt.shape
    Ls = memory.shape[0]
    H = params["n_head"]
    dh = D // H
    Ff = params["linear1_w"].shape[0]
    scale = 1.0 / math.sqrt(dh)   # divide by sqrt(dim_v_per_head)

    # single layout transform at entry/exit (batch-major inside the kernel)
    x_bm = jnp.transpose(tgt, (1, 0, 2))        # (B, Lq, D)
    mem_bm = jnp.transpose(memory, (1, 0, 2))   # (B, Ls, D)

    # masks: tiny int32, per batch, NOT replicated over heads
    self_mask = (tgt_subsequent_mask[None, :, :]
                 | tgt_padding_mask[:, None, :]).astype(jnp.int32)   # (B,Lq,Lq)
    cross_mask = src_padding_mask[:, None, :].astype(jnp.int32)      # (B,1,Ls)

    # weights: pre-transpose once, fuse QKV, fold 1/sqrt(dh) into q columns
    w_self_t = params["self_attn"]["w"].T                            # (D, 3D)
    w_self_t = jnp.concatenate([w_self_t[:, :D] * scale, w_self_t[:, D:]], axis=1)
    fcs_w_t = params["self_attn"]["fc_w"].T
    fcs_b = params["self_attn"]["fc_b"].reshape(1, D)

    w_enc = params["enc_attn"]["w"]
    wq_enc_t = w_enc[:D, :].T * scale                                # (D, D)
    wkv_enc_t = w_enc[D:, :].T                                       # (D, 2D)
    fce_w_t = params["enc_attn"]["fc_w"].T
    fce_b = params["enc_attn"]["fc_b"].reshape(1, D)

    w1_t = params["linear1_w"].T                                     # (D, F)
    b1 = params["linear1_b"].reshape(1, Ff)
    w2_t = params["linear2_w"].T                                     # (F, D)
    b2 = params["linear2_b"].reshape(1, D)

    ln1g = params["norm1_w"].reshape(1, D); ln1b = params["norm1_b"].reshape(1, D)
    ln2g = params["norm2_w"].reshape(1, D); ln2b = params["norm2_b"].reshape(1, D)
    ln3g = params["norm3_w"].reshape(1, D); ln3b = params["norm3_b"].reshape(1, D)

    weights = [w_self_t, fcs_w_t, fcs_b, wq_enc_t, wkv_enc_t, fce_w_t, fce_b,
               w1_t, b1, w2_t, b2, ln1g, ln1b, ln2g, ln2b, ln3g, ln3b]
    weight_specs = [pl.BlockSpec(w.shape, lambda b: (0, 0)) for w in weights]

    kernel = functools.partial(_decoder_layer_kernel, num_heads=H)

    out_bm = pl.pallas_call(
        kernel,
        out_shape=jax.ShapeDtypeStruct((B, Lq, D), jnp.float32),
        grid=(B,),
        in_specs=[
            pl.BlockSpec((1, Lq, D), lambda b: (b, 0, 0)),   # tgt (batch-major)
            pl.BlockSpec((1, Ls, D), lambda b: (b, 0, 0)),   # memory
            pl.BlockSpec((1, Lq, Lq), lambda b: (b, 0, 0)),  # self mask
            pl.BlockSpec((1, 1, Ls), lambda b: (b, 0, 0)),   # cross mask
        ] + weight_specs,
        out_specs=pl.BlockSpec((1, Lq, D), lambda b: (b, 0, 0)),
        scratch_shapes=[pltpu.VMEM((Lq, D), jnp.float32)],
        compiler_params=pltpu.CompilerParams(
            dimension_semantics=("parallel",)),
    )(x_bm, mem_bm, self_mask, cross_mask, *weights)

    return jnp.transpose(out_bm, (1, 0, 2))                  # back to (Lq, B, D)


# --------------------------------- params -----------------------------------

def init_params(key, d_model, n_head, dim_feedforward):
    ks = jax.random.split(key, 10)

    def rnd(k, shape):
        return 0.1 * jax.random.normal(k, shape, jnp.float32)

    params = {
        "n_head": n_head,
        "self_attn": {
            "w": rnd(ks[0], (3 * d_model, d_model)),
            "fc_w": rnd(ks[1], (d_model, d_model)),
            "fc_b": rnd(ks[2], (d_model,)),
        },
        "enc_attn": {
            "w": rnd(ks[3], (3 * d_model, d_model)),
            "fc_w": rnd(ks[4], (d_model, d_model)),
            "fc_b": rnd(ks[5], (d_model,)),
        },
        "linear1_w": rnd(ks[6], (dim_feedforward, d_model)),
        "linear1_b": rnd(ks[7], (dim_feedforward,)),
        "linear2_w": rnd(ks[8], (d_model, dim_feedforward)),
        "linear2_b": rnd(ks[9], (d_model,)),
        "norm1_w": jnp.ones((d_model,), jnp.float32),
        "norm1_b": jnp.zeros((d_model,), jnp.float32),
        "norm2_w": jnp.ones((d_model,), jnp.float32),
        "norm2_b": jnp.zeros((d_model,), jnp.float32),
        "norm3_w": jnp.ones((d_model,), jnp.float32),
        "norm3_b": jnp.zeros((d_model,), jnp.float32),
    }
    return params


# ----------------------------------- main ------------------------------------

if __name__ == "__main__":
    d_model = 32
    n_head = 4
    dim_feedforward = 64
    tgt_len = 8
    src_len = 12
    batch = 2

    key = jax.random.PRNGKey(0)
    k_p, k_t, k_m = jax.random.split(key, 3)

    params = init_params(k_p, d_model, n_head, dim_feedforward)

    tgt = jax.random.normal(k_t, (tgt_len, batch, d_model), jnp.float32)
    memory = jax.random.normal(k_m, (src_len, batch, d_model), jnp.float32)

    # padding masks: True = masked. Leading positions stay unmasked so no row
    # is fully masked (matching the reference module's non-degenerate usage).
    tgt_padding_mask = jnp.zeros((batch, tgt_len), bool).at[1, -2:].set(True)
    src_padding_mask = jnp.zeros((batch, src_len), bool).at[1, -3:].set(True)
    tgt_subsequent_mask = jnp.triu(jnp.ones((tgt_len, tgt_len), bool), k=1)

    out = decoder_layer(tgt, memory, src_padding_mask, tgt_padding_mask,
                        tgt_subsequent_mask, params)
    out = jax.block_until_ready(out)

    assert out.shape == (tgt_len, batch, d_model)
    assert bool(jnp.all(jnp.isfinite(out)))
    print("KERNEL_OK")
</pallas_src>

<mosaic_0001>
module attributes {stable_mosaic.version = 11 : i64} {
  func.func @_decoder_layer_kernel(%arg0: i32, %arg1: memref<1x8x32xf32, #tpu.memory_space<vmem>>, %arg2: memref<1x12x32xf32, #tpu.memory_space<vmem>>, %arg3: memref<1x8x8xi32, #tpu.memory_space<vmem>>, %arg4: memref<1x1x12xi32, #tpu.memory_space<vmem>>, %arg5: memref<32x96xf32, #tpu.memory_space<vmem>>, %arg6: memref<32x32xf32, #tpu.memory_space<vmem>>, %arg7: memref<1x32xf32, #tpu.memory_space<vmem>>, %arg8: memref<32x32xf32, #tpu.memory_space<vmem>>, %arg9: memref<32x64xf32, #tpu.memory_space<vmem>>, %arg10: memref<32x32xf32, #tpu.memory_space<vmem>>, %arg11: memref<1x32xf32, #tpu.memory_space<vmem>>, %arg12: memref<32x64xf32, #tpu.memory_space<vmem>>, %arg13: memref<1x64xf32, #tpu.memory_space<vmem>>, %arg14: memref<64x32xf32, #tpu.memory_space<vmem>>, %arg15: memref<1x32xf32, #tpu.memory_space<vmem>>, %arg16: memref<1x32xf32, #tpu.memory_space<vmem>>, %arg17: memref<1x32xf32, #tpu.memory_space<vmem>>, %arg18: memref<1x32xf32, #tpu.memory_space<vmem>>, %arg19: memref<1x32xf32, #tpu.memory_space<vmem>>, %arg20: memref<1x32xf32, #tpu.memory_space<vmem>>, %arg21: memref<1x32xf32, #tpu.memory_space<vmem>>, %arg22: memref<1x8x32xf32, #tpu.memory_space<vmem>>, %arg23: memref<8x32xf32, #tpu.memory_space<vmem>>) attributes {dimension_semantics = [#tpu.dimension_semantics<parallel>], iteration_bounds = array<i64: 2>, scalar_prefetch = 0 : i64, scratch_operands = 1 : i64, tpu.core_type = #tpu.core_type<tc>, window_params = [{transform_indices = @transform_0, window_bounds = array<i64: 1, 8, 32>}, {transform_indices = @transform_1, window_bounds = array<i64: 1, 12, 32>}, {transform_indices = @transform_2, window_bounds = array<i64: 1, 8, 8>}, {transform_indices = @transform_3, window_bounds = array<i64: 1, 1, 12>}, {pipeline_mode = #tpu.pipeline_mode<synchronous>, transform_indices = @transform_4, window_bounds = array<i64: 32, 96>}, {pipeline_mode = #tpu.pipeline_mode<synchronous>, transform_indices = @transform_5, window_bounds = array<i64: 32, 32>}, {pipeline_mode = #tpu.pipeline_mode<synchronous>, transform_indices = @transform_6, window_bounds = array<i64: 1, 32>}, {pipeline_mode = #tpu.pipeline_mode<synchronous>, transform_indices = @transform_7, window_bounds = array<i64: 32, 32>}, {pipeline_mode = #tpu.pipeline_mode<synchronous>, transform_indices = @transform_8, window_bounds = array<i64: 32, 64>}, {pipeline_mode = #tpu.pipeline_mode<synchronous>, transform_indices = @transform_9, window_bounds = array<i64: 32, 32>}, {pipeline_mode = #tpu.pipeline_mode<synchronous>, transform_indices = @transform_10, window_bounds = array<i64: 1, 32>}, {pipeline_mode = #tpu.pipeline_mode<synchronous>, transform_indices = @transform_11, window_bounds = array<i64: 32, 64>}, {pipeline_mode = #tpu.pipeline_mode<synchronous>, transform_indices = @transform_12, window_bounds = array<i64: 1, 64>}, {pipeline_mode = #tpu.pipeline_mode<synchronous>, transform_indices = @transform_13, window_bounds = array<i64: 64, 32>}, {pipeline_mode = #tpu.pipeline_mode<synchronous>, transform_indices = @transform_14, window_bounds = array<i64: 1, 32>}, {pipeline_mode = #tpu.pipeline_mode<synchronous>, transform_indices = @transform_15, window_bounds = array<i64: 1, 32>}, {pipeline_mode = #tpu.pipeline_mode<synchronous>, transform_indices = @transform_16, window_bounds = array<i64: 1, 32>}, {pipeline_mode = #tpu.pipeline_mode<synchronous>, transform_indices = @transform_17, window_bounds = array<i64: 1, 32>}, {pipeline_mode = #tpu.pipeline_mode<synchronous>, transform_indices = @transform_18, window_bounds = array<i64: 1, 32>}, {pipeline_mode = #tpu.pipeline_mode<synchronous>, transform_indices = @transform_19, window_bounds = array<i64: 1, 32>}, {pipeline_mode = #tpu.pipeline_mode<synchronous>, transform_indices = @transform_20, window_bounds = array<i64: 1, 32>}, {transform_indices = @transform_21, window_bounds = array<i64: 1, 8, 32>}]} {
    %c0 = arith.constant 0 : index
    %c0_0 = arith.constant 0 : index
    %c0_1 = arith.constant 0 : index
    %0 = vector.load %arg1[%c0, %c0_0, %c0_1] : memref<1x8x32xf32, #tpu.memory_space<vmem>>, vector<1x8x32xf32>
    %1 = vector.shape_cast %0 : vector<1x8x32xf32> to vector<8x32xf32>
    %c0_2 = arith.constant 0 : index
    %c0_3 = arith.constant 0 : index
    %c0_4 = arith.constant 0 : index
    %2 = vector.load %arg2[%c0_2, %c0_3, %c0_4] : memref<1x12x32xf32, #tpu.memory_space<vmem>>, vector<1x12x32xf32>
    %3 = vector.shape_cast %2 : vector<1x12x32xf32> to vector<12x32xf32>
    %c0_5 = arith.constant 0 : index
    %c0_6 = arith.constant 0 : index
    %c0_7 = arith.constant 0 : index
    %4 = vector.load %arg3[%c0_5, %c0_6, %c0_7] : memref<1x8x8xi32, #tpu.memory_space<vmem>>, vector<1x8x8xi32>
    %5 = vector.shape_cast %4 : vector<1x8x8xi32> to vector<8x8xi32>
    %c0_8 = arith.constant 0 : index
    %c0_9 = arith.constant 0 : index
    %c0_10 = arith.constant 0 : index
    %6 = vector.load %arg4[%c0_8, %c0_9, %c0_10] : memref<1x1x12xi32, #tpu.memory_space<vmem>>, vector<1x1x12xi32>
    %7 = vector.shape_cast %6 : vector<1x1x12xi32> to vector<1x12xi32>
    %c0_11 = arith.constant 0 : index
    %c0_12 = arith.constant 0 : index
    %8 = vector.load %arg5[%c0_11, %c0_12] : memref<32x96xf32, #tpu.memory_space<vmem>>, vector<32x96xf32>
    %cst = arith.constant dense<0.000000e+00> : vector<8x96xf32>
    %9 = tpu.matmul %1, %8, %cst {dimension_numbers = #tpu.dot_dimension_numbers<[1], [0], [0], [1], [0, 0, 1, 1], [], []>} : vector<8x32xf32>, vector<32x96xf32>, vector<8x96xf32> -> vector<8x96xf32>
    %10 = vector.extract_strided_slice %9 {offsets = [0, 0], sizes = [8, 32], strides = [1, 1]} : vector<8x96xf32> to vector<8x32xf32>
    %11 = vector.extract_strided_slice %9 {offsets = [0, 32], sizes = [8, 32], strides = [1, 1]} : vector<8x96xf32> to vector<8x32xf32>
    %12 = vector.extract_strided_slice %9 {offsets = [0, 64], sizes = [8, 32], strides = [1, 1]} : vector<8x96xf32> to vector<8x32xf32>
    %13 = vector.extract_strided_slice %10 {offsets = [0, 0], sizes = [8, 8], strides = [1, 1]} : vector<8x32xf32> to vector<8x8xf32>
    %14 = vector.extract_strided_slice %11 {offsets = [0, 0], sizes = [8, 8], strides = [1, 1]} : vector<8x32xf32> to vector<8x8xf32>
    %cst_13 = arith.constant dense<0.000000e+00> : vector<8x8xf32>
    %15 = tpu.matmul %13, %14, %cst_13 {dimension_numbers = #tpu.dot_dimension_numbers<[1], [1], [0], [0], [0, 0, 1, 0], [], []>} : vector<8x8xf32>, vector<8x8xf32>, vector<8x8xf32> -> vector<8x8xf32>
    %c0_i32 = arith.constant 0 : i32
    %16 = vector.broadcast %c0_i32 : i32 to vector<8x8xi32>
    %17 = arith.cmpi ne, %5, %16 : vector<8x8xi32>
    %cst_14 = arith.constant -1.000000e+30 : f32
    %18 = vector.broadcast %cst_14 : f32 to vector<8x8xf32>
    %19 = arith.select %17, %18, %15 : vector<8x8xi1>, vector<8x8xf32>
    %cst_15 = arith.constant dense<0xFF800000> : vector<8xf32>
    %20 = vector.multi_reduction <maximumf>, %19, %cst_15 [1] : vector<8x8xf32> to vector<8xf32>
    %21 = vector.shape_cast %20 : vector<8xf32> to vector<8x1xf32>
    %22 = vector.broadcast %21 : vector<8x1xf32> to vector<8x8xf32>
    %23 = arith.subf %19, %22 : vector<8x8xf32>
    %24 = math.exp %23 : vector<8x8xf32>
    %cst_16 = arith.constant dense<0.000000e+00> : vector<8xf32>
    %25 = vector.multi_reduction <add>, %24, %cst_16 [1] : vector<8x8xf32> to vector<8xf32>
    %26 = vector.shape_cast %25 : vector<8xf32> to vector<8x1xf32>
    %27 = tpu.reciprocal %26 {approx = true} : vector<8x1xf32> -> vector<8x1xf32>
    %28 = vector.broadcast %27 : vector<8x1xf32> to vector<8x8xf32>
    %29 = arith.mulf %24, %28 : vector<8x8xf32>
    %30 = vector.extract_strided_slice %12 {offsets = [0, 0], sizes = [8, 8], strides = [1, 1]} : vector<8x32xf32> to vector<8x8xf32>
    %cst_17 = arith.constant dense<0.000000e+00> : vector<8x8xf32>
    %31 = tpu.matmul %29, %30, %cst_17 {dimension_numbers = #tpu.dot_dimension_numbers<[1], [0], [0], [1], [0, 0, 1, 1], [], []>} : vector<8x8xf32>, vector<8x8xf32>, vector<8x8xf32> -> vector<8x8xf32>
    %c0_18 = arith.constant 0 : index
    %c0_19 = arith.constant 0 : index
    %32 = vector.load %arg23[%c0_18, %c0_19] : memref<8x32xf32, #tpu.memory_space<vmem>>, vector<8x8xf32>
    tpu.vector_store %arg23[%c0_18, %c0_19], %31 {strides = array<i32>} : memref<8x32xf32, #tpu.memory_space<vmem>>, vector<8x8xf32>,
    %33 = vector.extract_strided_slice %10 {offsets = [0, 8], sizes = [8, 8], strides = [1, 1]} : vector<8x32xf32> to vector<8x8xf32>
    %34 = vector.extract_strided_slice %11 {offsets = [0, 8], sizes = [8, 8], strides = [1, 1]} : vector<8x32xf32> to vector<8x8xf32>
    %cst_20 = arith.constant dense<0.000000e+00> : vector<8x8xf32>
    %35 = tpu.matmul %33, %34, %cst_20 {dimension_numbers = #tpu.dot_dimension_numbers<[1], [1], [0], [0], [0, 0, 1, 0], [], []>} : vector<8x8xf32>, vector<8x8xf32>, vector<8x8xf32> -> vector<8x8xf32>
    %c0_i32_21 = arith.constant 0 : i32
    %36 = vector.broadcast %c0_i32_21 : i32 to vector<8x8xi32>
    %37 = arith.cmpi ne, %5, %36 : vector<8x8xi32>
    %cst_22 = arith.constant -1.000000e+30 : f32
    %38 = vector.broadcast %cst_22 : f32 to vector<8x8xf32>
    %39 = arith.select %37, %38, %35 : vector<8x8xi1>, vector<8x8xf32>
    %cst_23 = arith.constant dense<0xFF800000> : vector<8xf32>
    %40 = vector.multi_reduction <maximumf>, %39, %cst_23 [1] : vector<8x8xf32> to vector<8xf32>
    %41 = vector.shape_cast %40 : vector<8xf32> to vector<8x1xf32>
    %42 = vector.broadcast %41 : vector<8x1xf32> to vector<8x8xf32>
    %43 = arith.subf %39, %42 : vector<8x8xf32>
    %44 = math.exp %43 : vector<8x8xf32>
    %cst_24 = arith.constant dense<0.000000e+00> : vector<8xf32>
    %45 = vector.multi_reduction <add>, %44, %cst_24 [1] : vector<8x8xf32> to vector<8xf32>
    %46 = vector.shape_cast %45 : vector<8xf32> to vector<8x1xf32>
    %47 = tpu.reciprocal %46 {approx = true} : vector<8x1xf32> -> vector<8x1xf32>
    %48 = vector.broadcast %47 : vector<8x1xf32> to vector<8x8xf32>
    %49 = arith.mulf %44, %48 : vector<8x8xf32>
    %50 = vector.extract_strided_slice %12 {offsets = [0, 8], sizes = [8, 8], strides = [1, 1]} : vector<8x32xf32> to vector<8x8xf32>
    %cst_25 = arith.constant dense<0.000000e+00> : vector<8x8xf32>
    %51 = tpu.matmul %49, %50, %cst_25 {dimension_numbers = #tpu.dot_dimension_numbers<[1], [0], [0], [1], [0, 0, 1, 1], [], []>} : vector<8x8xf32>, vector<8x8xf32>, vector<8x8xf32> -> vector<8x8xf32>
    %c0_26 = arith.constant 0 : index
    %c8 = arith.constant 8 : index
    %52 = vector.load %arg23[%c0_26, %c8] : memref<8x32xf32, #tpu.memory_space<vmem>>, vector<8x8xf32>
    tpu.vector_store %arg23[%c0_26, %c8], %51 {strides = array<i32>} : memref<8x32xf32, #tpu.memory_space<vmem>>, vector<8x8xf32>,
    %53 = vector.extract_strided_slice %10 {offsets = [0, 16], sizes = [8, 8], strides = [1, 1]} : vector<8x32xf32> to vector<8x8xf32>
    %54 = vector.extract_strided_slice %11 {offsets = [0, 16], sizes = [8, 8], strides = [1, 1]} : vector<8x32xf32> to vector<8x8xf32>
    %cst_27 = arith.constant dense<0.000000e+00> : vector<8x8xf32>
    %55 = tpu.matmul %53, %54, %cst_27 {dimension_numbers = #tpu.dot_dimension_numbers<[1], [1], [0], [0], [0, 0, 1, 0], [], []>} : vector<8x8xf32>, vector<8x8xf32>, vector<8x8xf32> -> vector<8x8xf32>
    %c0_i32_28 = arith.constant 0 : i32
    %56 = vector.broadcast %c0_i32_28 : i32 to vector<8x8xi32>
    %57 = arith.cmpi ne, %5, %56 : vector<8x8xi32>
    %cst_29 = arith.constant -1.000000e+30 : f32
    %58 = vector.broadcast %cst_29 : f32 to vector<8x8xf32>
    %59 = arith.select %57, %58, %55 : vector<8x8xi1>, vector<8x8xf32>
    %cst_30 = arith.constant dense<0xFF800000> : vector<8xf32>
    %60 = vector.multi_reduction <maximumf>, %59, %cst_30 [1] : vector<8x8xf32> to vector<8xf32>
    %61 = vector.shape_cast %60 : vector<8xf32> to vector<8x1xf32>
    %62 = vector.broadcast %61 : vector<8x1xf32> to vector<8x8xf32>
    %63 = arith.subf %59, %62 : vector<8x8xf32>
    %64 = math.exp %63 : vector<8x8xf32>
    %cst_31 = arith.constant dense<0.000000e+00> : vector<8xf32>
    %65 = vector.multi_reduction <add>, %64, %cst_31 [1] : vector<8x8xf32> to vector<8xf32>
    %66 = vector.shape_cast %65 : vector<8xf32> to vector<8x1xf32>
    %67 = tpu.reciprocal %66 {approx = true} : vector<8x1xf32> -> vector<8x1xf32>
    %68 = vector.broadcast %67 : vector<8x1xf32> to vector<8x8xf32>
    %69 = arith.mulf %64, %68 : vector<8x8xf32>
    %70 = vector.extract_strided_slice %12 {offsets = [0, 16], sizes = [8, 8], strides = [1, 1]} : vector<8x32xf32> to vector<8x8xf32>
    %cst_32 = arith.constant dense<0.000000e+00> : vector<8x8xf32>
    %71 = tpu.matmul %69, %70, %cst_32 {dimension_numbers = #tpu.dot_dimension_numbers<[1], [0], [0], [1], [0, 0, 1, 1], [], []>} : vector<8x8xf32>, vector<8x8xf32>, vector<8x8xf32> -> vector<8x8xf32>
    %c0_33 = arith.constant 0 : index
    %c16 = arith.constant 16 : index
    %72 = vector.load %arg23[%c0_33, %c16] : memref<8x32xf32, #tpu.memory_space<vmem>>, vector<8x8xf32>
    tpu.vector_store %arg23[%c0_33, %c16], %71 {strides = array<i32>} : memref<8x32xf32, #tpu.memory_space<vmem>>, vector<8x8xf32>,
    %73 = vector.extract_strided_slice %10 {offsets = [0, 24], sizes = [8, 8], strides = [1, 1]} : vector<8x32xf32> to vector<8x8xf32>
    %74 = vector.extract_strided_slice %11 {offsets = [0, 24], sizes = [8, 8], strides = [1, 1]} : vector<8x32xf32> to vector<8x8xf32>
    %cst_34 = arith.constant dense<0.000000e+00> : vector<8x8xf32>
    %75 = tpu.matmul %73, %74, %cst_34 {dimension_numbers = #tpu.dot_dimension_numbers<[1], [1], [0], [0], [0, 0, 1, 0], [], []>} : vector<8x8xf32>, vector<8x8xf32>, vector<8x8xf32> -> vector<8x8xf32>
    %c0_i32_35 = arith.constant 0 : i32
    %76 = vector.broadcast %c0_i32_35 : i32 to vector<8x8xi32>
    %77 = arith.cmpi ne, %5, %76 : vector<8x8xi32>
    %cst_36 = arith.constant -1.000000e+30 : f32
    %78 = vector.broadcast %cst_36 : f32 to vector<8x8xf32>
    %79 = arith.select %77, %78, %75 : vector<8x8xi1>, vector<8x8xf32>
    %cst_37 = arith.constant dense<0xFF800000> : vector<8xf32>
    %80 = vector.multi_reduction <maximumf>, %79, %cst_37 [1] : vector<8x8xf32> to vector<8xf32>
    %81 = vector.shape_cast %80 : vector<8xf32> to vector<8x1xf32>
    %82 = vector.broadcast %81 : vector<8x1xf32> to vector<8x8xf32>
    %83 = arith.subf %79, %82 : vector<8x8xf32>
    %84 = math.exp %83 : vector<8x8xf32>
    %cst_38 = arith.constant dense<0.000000e+00> : vector<8xf32>
    %85 = vector.multi_reduction <add>, %84, %cst_38 [1] : vector<8x8xf32> to vector<8xf32>
    %86 = vector.shape_cast %85 : vector<8xf32> to vector<8x1xf32>
    %87 = tpu.reciprocal %86 {approx = true} : vector<8x1xf32> -> vector<8x1xf32>
    %88 = vector.broadcast %87 : vector<8x1xf32> to vector<8x8xf32>
    %89 = arith.mulf %84, %88 : vector<8x8xf32>
    %90 = vector.extract_strided_slice %12 {offsets = [0, 24], sizes = [8, 8], strides = [1, 1]} : vector<8x32xf32> to vector<8x8xf32>
    %cst_39 = arith.constant dense<0.000000e+00> : vector<8x8xf32>
    %91 = tpu.matmul %89, %90, %cst_39 {dimension_numbers = #tpu.dot_dimension_numbers<[1], [0], [0], [1], [0, 0, 1, 1], [], []>} : vector<8x8xf32>, vector<8x8xf32>, vector<8x8xf32> -> vector<8x8xf32>
    %c0_40 = arith.constant 0 : index
    %c24 = arith.constant 24 : index
    %92 = vector.load %arg23[%c0_40, %c24] : memref<8x32xf32, #tpu.memory_space<vmem>>, vector<8x8xf32>
    tpu.vector_store %arg23[%c0_40, %c24], %91 {strides = array<i32>} : memref<8x32xf32, #tpu.memory_space<vmem>>, vector<8x8xf32>,
    %c0_41 = arith.constant 0 : index
    %c0_42 = arith.constant 0 : index
    %93 = vector.load %arg23[%c0_41, %c0_42] : memref<8x32xf32, #tpu.memory_space<vmem>>, vector<8x32xf32>
    %c0_43 = arith.constant 0 : index
    %c0_44 = arith.constant 0 : index
    %94 = vector.load %arg6[%c0_43, %c0_44] : memref<32x32xf32, #tpu.memory_space<vmem>>, vector<32x32xf32>
    %cst_45 = arith.constant dense<0.000000e+00> : vector<8x32xf32>
    %95 = tpu.matmul %93, %94, %cst_45 {dimension_numbers = #tpu.dot_dimension_numbers<[1], [0], [0], [1], [0, 0, 1, 1], [], []>} : vector<8x32xf32>, vector<32x32xf32>, vector<8x32xf32> -> vector<8x32xf32>
    %c0_46 = arith.constant 0 : index
    %c0_47 = arith.constant 0 : index
    %96 = vector.load %arg7[%c0_46, %c0_47] : memref<1x32xf32, #tpu.memory_space<vmem>>, vector<1x32xf32>
    %97 = vector.broadcast %96 : vector<1x32xf32> to vector<8x32xf32>
    %98 = arith.addf %95, %97 : vector<8x32xf32>
    %99 = arith.addf %1, %98 : vector<8x32xf32>
    %cst_48 = arith.constant dense<0.000000e+00> : vector<8xf32>
    %100 = vector.multi_reduction <add>, %99, %cst_48 [1] : vector<8x32xf32> to vector<8xf32>
    %101 = vector.shape_cast %100 : vector<8xf32> to vector<8x1xf32>
    %cst_49 = arith.constant 3.200000e+01 : f32
    %102 = vector.broadcast %cst_49 : f32 to vector<8x1xf32>
    %103 = arith.divf %101, %102 : vector<8x1xf32>
    %104 = vector.broadcast %103 : vector<8x1xf32> to vector<8x32xf32>
    %105 = arith.subf %99, %104 : vector<8x32xf32>
    %106 = arith.mulf %105, %105 : vector<8x32xf32>
    %cst_50 = arith.constant dense<0.000000e+00> : vector<8xf32>
    %107 = vector.multi_reduction <add>, %106, %cst_50 [1] : vector<8x32xf32> to vector<8xf32>
    %108 = vector.shape_cast %107 : vector<8xf32> to vector<8x1xf32>
    %cst_51 = arith.constant 3.200000e+01 : f32
    %109 = vector.broadcast %cst_51 : f32 to vector<8x1xf32>
    %110 = arith.divf %108, %109 : vector<8x1xf32>
    %111 = vector.broadcast %103 : vector<8x1xf32> to vector<8x32xf32>
    %112 = arith.subf %99, %111 : vector<8x32xf32>
    %cst_52 = arith.constant 9.99999974E-6 : f32
    %113 = vector.broadcast %cst_52 : f32 to vector<8x1xf32>
    %114 = arith.addf %110, %113 : vector<8x1xf32>
    %115 = math.rsqrt %114 : vector<8x1xf32>
    %116 = vector.broadcast %115 : vector<8x1xf32> to vector<8x32xf32>
    %117 = arith.mulf %112, %116 : vector<8x32xf32>
    %c0_53 = arith.constant 0 : index
    %c0_54 = arith.constant 0 : index
    %118 = vector.load %arg16[%c0_53, %c0_54] : memref<1x32xf32, #tpu.memory_space<vmem>>, vector<1x32xf32>
    %119 = vector.broadcast %118 : vector<1x32xf32> to vector<8x32xf32>
    %120 = arith.mulf %117, %119 : vector<8x32xf32>
    %c0_55 = arith.constant 0 : index
    %c0_56 = arith.constant 0 : index
    %121 = vector.load %arg17[%c0_55, %c0_56] : memref<1x32xf32, #tpu.memory_space<vmem>>, vector<1x32xf32>
    %122 = vector.broadcast %121 : vector<1x32xf32> to vector<8x32xf32>
    %123 = arith.addf %120, %122 : vector<8x32xf32>
    %c0_57 = arith.constant 0 : index
    %c0_58 = arith.constant 0 : index
    %124 = vector.load %arg8[%c0_57, %c0_58] : memref<32x32xf32, #tpu.memory_space<vmem>>, vector<32x32xf32>
    %cst_59 = arith.constant dense<0.000000e+00> : vector<8x32xf32>
    %125 = tpu.matmul %123, %124, %cst_59 {dimension_numbers = #tpu.dot_dimension_numbers<[1], [0], [0], [1], [0, 0, 1, 1], [], []>} : vector<8x32xf32>, vector<32x32xf32>, vector<8x32xf32> -> vector<8x32xf32>
    %c0_60 = arith.constant 0 : index
    %c0_61 = arith.constant 0 : index
    %126 = vector.load %arg9[%c0_60, %c0_61] : memref<32x64xf32, #tpu.memory_space<vmem>>, vector<32x64xf32>
    %cst_62 = arith.constant dense<0.000000e+00> : vector<12x64xf32>
    %127 = tpu.matmul %3, %126, %cst_62 {dimension_numbers = #tpu.dot_dimension_numbers<[1], [0], [0], [1], [0, 0, 1, 1], [], []>} : vector<12x32xf32>, vector<32x64xf32>, vector<12x64xf32> -> vector<12x64xf32>
    %128 = vector.extract_strided_slice %127 {offsets = [0, 0], sizes = [12, 32], strides = [1, 1]} : vector<12x64xf32> to vector<12x32xf32>
    %129 = vector.extract_strided_slice %127 {offsets = [0, 32], sizes = [12, 32], strides = [1, 1]} : vector<12x64xf32> to vector<12x32xf32>
    %130 = vector.extract_strided_slice %125 {offsets = [0, 0], sizes = [8, 8], strides = [1, 1]} : vector<8x32xf32> to vector<8x8xf32>
    %131 = vector.extract_strided_slice %128 {offsets = [0, 0], sizes = [12, 8], strides = [1, 1]} : vector<12x32xf32> to vector<12x8xf32>
    %cst_63 = arith.constant dense<0.000000e+00> : vector<8x12xf32>
    %132 = tpu.matmul %130, %131, %cst_63 {dimension_numbers = #tpu.dot_dimension_numbers<[1], [1], [0], [0], [0, 0, 1, 0], [], []>} : vector<8x8xf32>, vector<12x8xf32>, vector<8x12xf32> -> vector<8x12xf32>
    %c0_i32_64 = arith.constant 0 : i32
    %133 = vector.broadcast %c0_i32_64 : i32 to vector<1x12xi32>
    %134 = arith.cmpi ne, %7, %133 : vector<1x12xi32>
    %cst_65 = arith.constant -1.000000e+30 : f32
    %135 = vector.shape_cast %134 : vector<1x12xi1> to vector<1x12xi1>
    %136 = vector.broadcast %135 : vector<1x12xi1> to vector<8x12xi1>
    %137 = vector.broadcast %cst_65 : f32 to vector<8x12xf32>
    %138 = arith.select %136, %137, %132 : vector<8x12xi1>, vector<8x12xf32>
    %cst_66 = arith.constant dense<0xFF800000> : vector<8xf32>
    %139 = vector.multi_reduction <maximumf>, %138, %cst_66 [1] : vector<8x12xf32> to vector<8xf32>
    %140 = vector.shape_cast %139 : vector<8xf32> to vector<8x1xf32>
    %141 = vector.broadcast %140 : vector<8x1xf32> to vector<8x12xf32>
    %142 = arith.subf %138, %141 : vector<8x12xf32>
    %143 = math.exp %142 : vector<8x12xf32>
    %cst_67 = arith.constant dense<0.000000e+00> : vector<8xf32>
    %144 = vector.multi_reduction <add>, %143, %cst_67 [1] : vector<8x12xf32> to vector<8xf32>
    %145 = vector.shape_cast %144 : vector<8xf32> to vector<8x1xf32>
    %146 = tpu.reciprocal %145 {approx = true} : vector<8x1xf32> -> vector<8x1xf32>
    %147 = vector.broadcast %146 : vector<8x1xf32> to vector<8x12xf32>
    %148 = arith.mulf %143, %147 : vector<8x12xf32>
    %149 = vector.extract_strided_slice %129 {offsets = [0, 0], sizes = [12, 8], strides = [1, 1]} : vector<12x32xf32> to vector<12x8xf32>
    %cst_68 = arith.constant dense<0.000000e+00> : vector<8x8xf32>
    %150 = tpu.matmul %148, %149, %cst_68 {dimension_numbers = #tpu.dot_dimension_numbers<[1], [0], [0], [1], [0, 0, 1, 1], [], []>} : vector<8x12xf32>, vector<12x8xf32>, vector<8x8xf32> -> vector<8x8xf32>
    %c0_69 = arith.constant 0 : index
    %c0_70 = arith.constant 0 : index
    %151 = vector.load %arg23[%c0_69, %c0_70] : memref<8x32xf32, #tpu.memory_space<vmem>>, vector<8x8xf32>
    tpu.vector_store %arg23[%c0_69, %c0_70], %150 {strides = array<i32>} : memref<8x32xf32, #tpu.memory_space<vmem>>, vector<8x8xf32>,
    %152 = vector.extract_strided_slice %125 {offsets = [0, 8], sizes = [8, 8], strides = [1, 1]} : vector<8x32xf32> to vector<8x8xf32>
    %153 = vector.extract_strided_slice %128 {offsets = [0, 8], sizes = [12, 8], strides = [1, 1]} : vector<12x32xf32> to vector<12x8xf32>
    %cst_71 = arith.constant dense<0.000000e+00> : vector<8x12xf32>
    %154 = tpu.matmul %152, %153, %cst_71 {dimension_numbers = #tpu.dot_dimension_numbers<[1], [1], [0], [0], [0, 0, 1, 0], [], []>} : vector<8x8xf32>, vector<12x8xf32>, vector<8x12xf32> -> vector<8x12xf32>
    %c0_i32_72 = arith.constant 0 : i32
    %155 = vector.broadcast %c0_i32_72 : i32 to vector<1x12xi32>
    %156 = arith.cmpi ne, %7, %155 : vector<1x12xi32>
    %cst_73 = arith.constant -1.000000e+30 : f32
    %157 = vector.shape_cast %156 : vector<1x12xi1> to vector<1x12xi1>
    %158 = vector.broadcast %157 : vector<1x12xi1> to vector<8x12xi1>
    %159 = vector.broadcast %cst_73 : f32 to vector<8x12xf32>
    %160 = arith.select %158, %159, %154 : vector<8x12xi1>, vector<8x12xf32>
    %cst_74 = arith.constant dense<0xFF800000> : vector<8xf32>
    %161 = vector.multi_reduction <maximumf>, %160, %cst_74 [1] : vector<8x12xf32> to vector<8xf32>
    %162 = vector.shape_cast %161 : vector<8xf32> to vector<8x1xf32>
    %163 = vector.broadcast %162 : vector<8x1xf32> to vector<8x12xf32>
    %164 = arith.subf %160, %163 : vector<8x12xf32>
    %165 = math.exp %164 : vector<8x12xf32>
    %cst_75 = arith.constant dense<0.000000e+00> : vector<8xf32>
    %166 = vector.multi_reduction <add>, %165, %cst_75 [1] : vector<8x12xf32> to vector<8xf32>
    %167 = vector.shape_cast %166 : vector<8xf32> to vector<8x1xf32>
    %168 = tpu.reciprocal %167 {approx = true} : vector<8x1xf32> -> vector<8x1xf32>
    %169 = vector.broadcast %168 : vector<8x1xf32> to vector<8x12xf32>
    %170 = arith.mulf %165, %169 : vector<8x12xf32>
    %171 = vector.extract_strided_slice %129 {offsets = [0, 8], sizes = [12, 8], strides = [1, 1]} : vector<12x32xf32> to vector<12x8xf32>
    %cst_76 = arith.constant dense<0.000000e+00> : vector<8x8xf32>
    %172 = tpu.matmul %170, %171, %cst_76 {dimension_numbers = #tpu.dot_dimension_numbers<[1], [0], [0], [1], [0, 0, 1, 1], [], []>} : vector<8x12xf32>, vector<12x8xf32>, vector<8x8xf32> -> vector<8x8xf32>
    %c0_77 = arith.constant 0 : index
    %c8_78 = arith.constant 8 : index
    %173 = vector.load %arg23[%c0_77, %c8_78] : memref<8x32xf32, #tpu.memory_space<vmem>>, vector<8x8xf32>
    tpu.vector_store %arg23[%c0_77, %c8_78], %172 {strides = array<i32>} : memref<8x32xf32, #tpu.memory_space<vmem>>, vector<8x8xf32>,
    %174 = vector.extract_strided_slice %125 {offsets = [0, 16], sizes = [8, 8], strides = [1, 1]} : vector<8x32xf32> to vector<8x8xf32>
    %175 = vector.extract_strided_slice %128 {offsets = [0, 16], sizes = [12, 8], strides = [1, 1]} : vector<12x32xf32> to vector<12x8xf32>
    %cst_79 = arith.constant dense<0.000000e+00> : vector<8x12xf32>
    %176 = tpu.matmul %174, %175, %cst_79 {dimension_numbers = #tpu.dot_dimension_numbers<[1], [1], [0], [0], [0, 0, 1, 0], [], []>} : vector<8x8xf32>, vector<12x8xf32>, vector<8x12xf32> -> vector<8x12xf32>
    %c0_i32_80 = arith.constant 0 : i32
    %177 = vector.broadcast %c0_i32_80 : i32 to vector<1x12xi32>
    %178 = arith.cmpi ne, %7, %177 : vector<1x12xi32>
    %cst_81 = arith.constant -1.000000e+30 : f32
    %179 = vector.shape_cast %178 : vector<1x12xi1> to vector<1x12xi1>
    %180 = vector.broadcast %179 : vector<1x12xi1> to vector<8x12xi1>
    %181 = vector.broadcast %cst_81 : f32 to vector<8x12xf32>
    %182 = arith.select %180, %181, %176 : vector<8x12xi1>, vector<8x12xf32>
    %cst_82 = arith.constant dense<0xFF800000> : vector<8xf32>
    %183 = vector.multi_reduction <maximumf>, %182, %cst_82 [1] : vector<8x12xf32> to vector<8xf32>
    %184 = vector.shape_cast %183 : vector<8xf32> to vector<8x1xf32>
    %185 = vector.broadcast %184 : vector<8x1xf32> to vector<8x12xf32>
    %186 = arith.subf %182, %185 : vector<8x12xf32>
    %187 = math.exp %186 : vector<8x12xf32>
    %cst_83 = arith.constant dense<0.000000e+00> : vector<8xf32>
    %188 = vector.multi_reduction <add>, %187, %cst_83 [1] : vector<8x12xf32> to vector<8xf32>
    %189 = vector.shape_cast %188 : vector<8xf32> to vector<8x1xf32>
    %190 = tpu.reciprocal %189 {approx = true} : vector<8x1xf32> -> vector<8x1xf32>
    %191 = vector.broadcast %190 : vector<8x1xf32> to vector<8x12xf32>
    %192 = arith.mulf %187, %191 : vector<8x12xf32>
    %193 = vector.extract_strided_slice %129 {offsets = [0, 16], sizes = [12, 8], strides = [1, 1]} : vector<12x32xf32> to vector<12x8xf32>
    %cst_84 = arith.constant dense<0.000000e+00> : vector<8x8xf32>
    %194 = tpu.matmul %192, %193, %cst_84 {dimension_numbers = #tpu.dot_dimension_numbers<[1], [0], [0], [1], [0, 0, 1, 1], [], []>} : vector<8x12xf32>, vector<12x8xf32>, vector<8x8xf32> -> vector<8x8xf32>
    %c0_85 = arith.constant 0 : index
    %c16_86 = arith.constant 16 : index
    %195 = vector.load %arg23[%c0_85, %c16_86] : memref<8x32xf32, #tpu.memory_space<vmem>>, vector<8x8xf32>
    tpu.vector_store %arg23[%c0_85, %c16_86], %194 {strides = array<i32>} : memref<8x32xf32, #tpu.memory_space<vmem>>, vector<8x8xf32>,
    %196 = vector.extract_strided_slice %125 {offsets = [0, 24], sizes = [8, 8], strides = [1, 1]} : vector<8x32xf32> to vector<8x8xf32>
    %197 = vector.extract_strided_slice %128 {offsets = [0, 24], sizes = [12, 8], strides = [1, 1]} : vector<12x32xf32> to vector<12x8xf32>
    %cst_87 = arith.constant dense<0.000000e+00> : vector<8x12xf32>
    %198 = tpu.matmul %196, %197, %cst_87 {dimension_numbers = #tpu.dot_dimension_numbers<[1], [1], [0], [0], [0, 0, 1, 0], [], []>} : vector<8x8xf32>, vector<12x8xf32>, vector<8x12xf32> -> vector<8x12xf32>
    %c0_i32_88 = arith.constant 0 : i32
    %199 = vector.broadcast %c0_i32_88 : i32 to vector<1x12xi32>
    %200 = arith.cmpi ne, %7, %199 : vector<1x12xi32>
    %cst_89 = arith.constant -1.000000e+30 : f32
    %201 = vector.shape_cast %200 : vector<1x12xi1> to vector<1x12xi1>
    %202 = vector.broadcast %201 : vector<1x12xi1> to vector<8x12xi1>
    %203 = vector.broadcast %cst_89 : f32 to vector<8x12xf32>
    %204 = arith.select %202, %203, %198 : vector<8x12xi1>, vector<8x12xf32>
    %cst_90 = arith.constant dense<0xFF800000> : vector<8xf32>
    %205 = vector.multi_reduction <maximumf>, %204, %cst_90 [1] : vector<8x12xf32> to vector<8xf32>
    %206 = vector.shape_cast %205 : vector<8xf32> to vector<8x1xf32>
    %207 = vector.broadcast %206 : vector<8x1xf32> to vector<8x12xf32>
    %208 = arith.subf %204, %207 : vector<8x12xf32>
    %209 = math.exp %208 : vector<8x12xf32>
    %cst_91 = arith.constant dense<0.000000e+00> : vector<8xf32>
    %210 = vector.multi_reduction <add>, %209, %cst_91 [1] : vector<8x12xf32> to vector<8xf32>
    %211 = vector.shape_cast %210 : vector<8xf32> to vector<8x1xf32>
    %212 = tpu.reciprocal %211 {approx = true} : vector<8x1xf32> -> vector<8x1xf32>
    %213 = vector.broadcast %212 : vector<8x1xf32> to vector<8x12xf32>
    %214 = arith.mulf %209, %213 : vector<8x12xf32>
    %215 = vector.extract_strided_slice %129 {offsets = [0, 24], sizes = [12, 8], strides = [1, 1]} : vector<12x32xf32> to vector<12x8xf32>
    %cst_92 = arith.constant dense<0.000000e+00> : vector<8x8xf32>
    %216 = tpu.matmul %214, %215, %cst_92 {dimension_numbers = #tpu.dot_dimension_numbers<[1], [0], [0], [1], [0, 0, 1, 1], [], []>} : vector<8x12xf32>, vector<12x8xf32>, vector<8x8xf32> -> vector<8x8xf32>
    %c0_93 = arith.constant 0 : index
    %c24_94 = arith.constant 24 : index
    %217 = vector.load %arg23[%c0_93, %c24_94] : memref<8x32xf32, #tpu.memory_space<vmem>>, vector<8x8xf32>
    tpu.vector_store %arg23[%c0_93, %c24_94], %216 {strides = array<i32>} : memref<8x32xf32, #tpu.memory_space<vmem>>, vector<8x8xf32>,
    %c0_95 = arith.constant 0 : index
    %c0_96 = arith.constant 0 : index
    %218 = vector.load %arg23[%c0_95, %c0_96] : memref<8x32xf32, #tpu.memory_space<vmem>>, vector<8x32xf32>
    %c0_97 = arith.constant 0 : index
    %c0_98 = arith.constant 0 : index
    %219 = vector.load %arg10[%c0_97, %c0_98] : memref<32x32xf32, #tpu.memory_space<vmem>>, vector<32x32xf32>
    %cst_99 = arith.constant dense<0.000000e+00> : vector<8x32xf32>
    %220 = tpu.matmul %218, %219, %cst_99 {dimension_numbers = #tpu.dot_dimension_numbers<[1], [0], [0], [1], [0, 0, 1, 1], [], []>} : vector<8x32xf32>, vector<32x32xf32>, vector<8x32xf32> -> vector<8x32xf32>
    %c0_100 = arith.constant 0 : index
    %c0_101 = arith.constant 0 : index
    %221 = vector.load %arg11[%c0_100, %c0_101] : memref<1x32xf32, #tpu.memory_space<vmem>>, vector<1x32xf32>
    %222 = vector.broadcast %221 : vector<1x32xf32> to vector<8x32xf32>
    %223 = arith.addf %220, %222 : vector<8x32xf32>
    %224 = arith.addf %123, %223 : vector<8x32xf32>
    %cst_102 = arith.constant dense<0.000000e+00> : vector<8xf32>
    %225 = vector.multi_reduction <add>, %224, %cst_102 [1] : vector<8x32xf32> to vector<8xf32>
    %226 = vector.shape_cast %225 : vector<8xf32> to vector<8x1xf32>
    %cst_103 = arith.constant 3.200000e+01 : f32
    %227 = vector.broadcast %cst_103 : f32 to vector<8x1xf32>
    %228 = arith.divf %226, %227 : vector<8x1xf32>
    %229 = vector.broadcast %228 : vector<8x1xf32> to vector<8x32xf32>
    %230 = arith.subf %224, %229 : vector<8x32xf32>
    %231 = arith.mulf %230, %230 : vector<8x32xf32>
    %cst_104 = arith.constant dense<0.000000e+00> : vector<8xf32>
    %232 = vector.multi_reduction <add>, %231, %cst_104 [1] : vector<8x32xf32> to vector<8xf32>
    %233 = vector.shape_cast %232 : vector<8xf32> to vector<8x1xf32>
    %cst_105 = arith.constant 3.200000e+01 : f32
    %234 = vector.broadcast %cst_105 : f32 to vector<8x1xf32>
    %235 = arith.divf %233, %234 : vector<8x1xf32>
    %236 = vector.broadcast %228 : vector<8x1xf32> to vector<8x32xf32>
    %237 = arith.subf %224, %236 : vector<8x32xf32>
    %cst_106 = arith.constant 9.99999974E-6 : f32
    %238 = vector.broadcast %cst_106 : f32 to vector<8x1xf32>
    %239 = arith.addf %235, %238 : vector<8x1xf32>
    %240 = math.rsqrt %239 : vector<8x1xf32>
    %241 = vector.broadcast %240 : vector<8x1xf32> to vector<8x32xf32>
    %242 = arith.mulf %237, %241 : vector<8x32xf32>
    %c0_107 = arith.constant 0 : index
    %c0_108 = arith.constant 0 : index
    %243 = vector.load %arg18[%c0_107, %c0_108] : memref<1x32xf32, #tpu.memory_space<vmem>>, vector<1x32xf32>
    %244 = vector.broadcast %243 : vector<1x32xf32> to vector<8x32xf32>
    %245 = arith.mulf %242, %244 : vector<8x32xf32>
    %c0_109 = arith.constant 0 : index
    %c0_110 = arith.constant 0 : index
    %246 = vector.load %arg19[%c0_109, %c0_110] : memref<1x32xf32, #tpu.memory_space<vmem>>, vector<1x32xf32>
    %247 = vector.broadcast %246 : vector<1x32xf32> to vector<8x32xf32>
    %248 = arith.addf %245, %247 : vector<8x32xf32>
    %c0_111 = arith.constant 0 : index
    %c0_112 = arith.constant 0 : index
    %249 = vector.load %arg12[%c0_111, %c0_112] : memref<32x64xf32, #tpu.memory_space<vmem>>, vector<32x64xf32>
    %cst_113 = arith.constant dense<0.000000e+00> : vector<8x64xf32>
    %250 = tpu.matmul %248, %249, %cst_113 {dimension_numbers = #tpu.dot_dimension_numbers<[1], [0], [0], [1], [0, 0, 1, 1], [], []>} : vector<8x32xf32>, vector<32x64xf32>, vector<8x64xf32> -> vector<8x64xf32>
    %c0_114 = arith.constant 0 : index
    %c0_115 = arith.constant 0 : index
    %251 = vector.load %arg13[%c0_114, %c0_115] : memref<1x64xf32, #tpu.memory_space<vmem>>, vector<1x64xf32>
    %252 = vector.broadcast %251 : vector<1x64xf32> to vector<8x64xf32>
    %253 = arith.addf %250, %252 : vector<8x64xf32>
    %cst_116 = arith.constant 0.000000e+00 : f32
    %254 = vector.broadcast %cst_116 : f32 to vector<8x64xf32>
    %255 = arith.maximumf %253, %254 : vector<8x64xf32>
    %c0_117 = arith.constant 0 : index
    %c0_118 = arith.constant 0 : index
    %256 = vector.load %arg14[%c0_117, %c0_118] : memref<64x32xf32, #tpu.memory_space<vmem>>, vector<64x32xf32>
    %cst_119 = arith.constant dense<0.000000e+00> : vector<8x32xf32>
    %257 = tpu.matmul %255, %256, %cst_119 {dimension_numbers = #tpu.dot_dimension_numbers<[1], [0], [0], [1], [0, 0, 1, 1], [], []>} : vector<8x64xf32>, vector<64x32xf32>, vector<8x32xf32> -> vector<8x32xf32>
    %c0_120 = arith.constant 0 : index
    %c0_121 = arith.constant 0 : index
    %258 = vector.load %arg15[%c0_120, %c0_121] : memref<1x32xf32, #tpu.memory_space<vmem>>, vector<1x32xf32>
    %259 = vector.broadcast %258 : vector<1x32xf32> to vector<8x32xf32>
    %260 = arith.addf %257, %259 : vector<8x32xf32>
    %261 = arith.addf %248, %260 : vector<8x32xf32>
    %cst_122 = arith.constant dense<0.000000e+00> : vector<8xf32>
    %262 = vector.multi_reduction <add>, %261, %cst_122 [1] : vector<8x32xf32> to vector<8xf32>
    %263 = vector.shape_cast %262 : vector<8xf32> to vector<8x1xf32>
    %cst_123 = arith.constant 3.200000e+01 : f32
    %264 = vector.broadcast %cst_123 : f32 to vector<8x1xf32>
    %265 = arith.divf %263, %264 : vector<8x1xf32>
    %266 = vector.broadcast %265 : vector<8x1xf32> to vector<8x32xf32>
    %267 = arith.subf %261, %266 : vector<8x32xf32>
    %268 = arith.mulf %267, %267 : vector<8x32xf32>
    %cst_124 = arith.constant dense<0.000000e+00> : vector<8xf32>
    %269 = vector.multi_reduction <add>, %268, %cst_124 [1] : vector<8x32xf32> to vector<8xf32>
    %270 = vector.shape_cast %269 : vector<8xf32> to vector<8x1xf32>
    %cst_125 = arith.constant 3.200000e+01 : f32
    %271 = vector.broadcast %cst_125 : f32 to vector<8x1xf32>
    %272 = arith.divf %270, %271 : vector<8x1xf32>
    %273 = vector.broadcast %265 : vector<8x1xf32> to vector<8x32xf32>
    %274 = arith.subf %261, %273 : vector<8x32xf32>
    %cst_126 = arith.constant 9.99999974E-6 : f32
    %275 = vector.broadcast %cst_126 : f32 to vector<8x1xf32>
    %276 = arith.addf %272, %275 : vector<8x1xf32>
    %277 = math.rsqrt %276 : vector<8x1xf32>
    %278 = vector.broadcast %277 : vector<8x1xf32> to vector<8x32xf32>
    %279 = arith.mulf %274, %278 : vector<8x32xf32>
    %c0_127 = arith.constant 0 : index
    %c0_128 = arith.constant 0 : index
    %280 = vector.load %arg20[%c0_127, %c0_128] : memref<1x32xf32, #tpu.memory_space<vmem>>, vector<1x32xf32>
    %281 = vector.broadcast %280 : vector<1x32xf32> to vector<8x32xf32>
    %282 = arith.mulf %279, %281 : vector<8x32xf32>
    %c0_129 = arith.constant 0 : index
    %c0_130 = arith.constant 0 : index
    %283 = vector.load %arg21[%c0_129, %c0_130] : memref<1x32xf32, #tpu.memory_space<vmem>>, vector<1x32xf32>
    %284 = vector.broadcast %283 : vector<1x32xf32> to vector<8x32xf32>
    %285 = arith.addf %282, %284 : vector<8x32xf32>
    %c0_131 = arith.constant 0 : index
    %c0_132 = arith.constant 0 : index
    %c0_133 = arith.constant 0 : index
    %286 = vector.load %arg22[%c0_131, %c0_132, %c0_133] : memref<1x8x32xf32, #tpu.memory_space<vmem>>, vector<1x8x32xf32>
    %287 = vector.shape_cast %286 : vector<1x8x32xf32> to vector<8x32xf32>
    %288 = vector.shape_cast %285 : vector<8x32xf32> to vector<1x8x32xf32>
    tpu.vector_store %arg22[%c0_131, %c0_132, %c0_133], %288 {strides = array<i32>} : memref<1x8x32xf32, #tpu.memory_space<vmem>>, vector<1x8x32xf32>,
    return
  }
  func.func @transform_0(%arg0: i32) -> (i32, i32, i32) {
    %c0_i32 = arith.constant 0 : i32
    %c0_i32_0 = arith.constant 0 : i32
    %c0_i32_1 = arith.constant 0 : i32
    return %arg0, %c0_i32, %c0_i32_0 : i32, i32, i32
  }
  func.func @transform_1(%arg0: i32) -> (i32, i32, i32) {
    %c0_i32 = arith.constant 0 : i32
    %c0_i32_0 = arith.constant 0 : i32
    %c0_i32_1 = arith.constant 0 : i32
    return %arg0, %c0_i32, %c0_i32_0 : i32, i32, i32
  }
  func.func @transform_2(%arg0: i32) -> (i32, i32, i32) {
    %c0_i32 = arith.constant 0 : i32
    %c0_i32_0 = arith.constant 0 : i32
    %c0_i32_1 = arith.constant 0 : i32
    return %arg0, %c0_i32, %c0_i32_0 : i32, i32, i32
  }
  func.func @transform_3(%arg0: i32) -> (i32, i32, i32) {
    %c0_i32 = arith.constant 0 : i32
    %c0_i32_0 = arith.constant 0 : i32
    %c0_i32_1 = arith.constant 0 : i32
    return %arg0, %c0_i32, %c0_i32_0 : i32, i32, i32
  }
  func.func @transform_4(%arg0: i32) -> (i32, i32) {
    %c0_i32 = arith.constant 0 : i32
    %c0_i32_0 = arith.constant 0 : i32
    %c0_i32_1 = arith.constant 0 : i32
    return %c0_i32, %c0_i32_0 : i32, i32
  }
  func.func @transform_5(%arg0: i32) -> (i32, i32) {
    %c0_i32 = arith.constant 0 : i32
    %c0_i32_0 = arith.constant 0 : i32
    %c0_i32_1 = arith.constant 0 : i32
    return %c0_i32, %c0_i32_0 : i32, i32
  }
  func.func @transform_6(%arg0: i32) -> (i32, i32) {
    %c0_i32 = arith.constant 0 : i32
    %c0_i32_0 = arith.constant 0 : i32
    %c0_i32_1 = arith.constant 0 : i32
    return %c0_i32, %c0_i32_0 : i32, i32
  }
  func.func @transform_7(%arg0: i32) -> (i32, i32) {
    %c0_i32 = arith.constant 0 : i32
    %c0_i32_0 = arith.constant 0 : i32
    %c0_i32_1 = arith.constant 0 : i32
    return %c0_i32, %c0_i32_0 : i32, i32
  }
  func.func @transform_8(%arg0: i32) -> (i32, i32) {
    %c0_i32 = arith.constant 0 : i32
    %c0_i32_0 = arith.constant 0 : i32
    %c0_i32_1 = arith.constant 0 : i32
    return %c0_i32, %c0_i32_0 : i32, i32
  }
  func.func @transform_9(%arg0: i32) -> (i32, i32) {
    %c0_i32 = arith.constant 0 : i32
    %c0_i32_0 = arith.constant 0 : i32
    %c0_i32_1 = arith.constant 0 : i32
    return %c0_i32, %c0_i32_0 : i32, i32
  }
  func.func @transform_10(%arg0: i32) -> (i32, i32) {
    %c0_i32 = arith.constant 0 : i32
    %c0_i32_0 = arith.constant 0 : i32
    %c0_i32_1 = arith.constant 0 : i32
    return %c0_i32, %c0_i32_0 : i32, i32
  }
  func.func @transform_11(%arg0: i32) -> (i32, i32) {
    %c0_i32 = arith.constant 0 : i32
    %c0_i32_0 = arith.constant 0 : i32
    %c0_i32_1 = arith.constant 0 : i32
    return %c0_i32, %c0_i32_0 : i32, i32
  }
  func.func @transform_12(%arg0: i32) -> (i32, i32) {
    %c0_i32 = arith.constant 0 : i32
    %c0_i32_0 = arith.constant 0 : i32
    %c0_i32_1 = arith.constant 0 : i32
    return %c0_i32, %c0_i32_0 : i32, i32
  }
  func.func @transform_13(%arg0: i32) -> (i32, i32) {
    %c0_i32 = arith.constant 0 : i32
    %c0_i32_0 = arith.constant 0 : i32
    %c0_i32_1 = arith.constant 0 : i32
    return %c0_i32, %c0_i32_0 : i32, i32
  }
  func.func @transform_14(%arg0: i32) -> (i32, i32) {
    %c0_i32 = arith.constant 0 : i32
    %c0_i32_0 = arith.constant 0 : i32
    %c0_i32_1 = arith.constant 0 : i32
    return %c0_i32, %c0_i32_0 : i32, i32
  }
  func.func @transform_15(%arg0: i32) -> (i32, i32) {
    %c0_i32 = arith.constant 0 : i32
    %c0_i32_0 = arith.constant 0 : i32
    %c0_i32_1 = arith.constant 0 : i32
    return %c0_i32, %c0_i32_0 : i32, i32
  }
  func.func @transform_16(%arg0: i32) -> (i32, i32) {
    %c0_i32 = arith.constant 0 : i32
    %c0_i32_0 = arith.constant 0 : i32
    %c0_i32_1 = arith.constant 0 : i32
    return %c0_i32, %c0_i32_0 : i32, i32
  }
  func.func @transform_17(%arg0: i32) -> (i32, i32) {
    %c0_i32 = arith.constant 0 : i32
    %c0_i32_0 = arith.constant 0 : i32
    %c0_i32_1 = arith.constant 0 : i32
    return %c0_i32, %c0_i32_0 : i32, i32
  }
  func.func @transform_18(%arg0: i32) -> (i32, i32) {
    %c0_i32 = arith.constant 0 : i32
    %c0_i32_0 = arith.constant 0 : i32
    %c0_i32_1 = arith.constant 0 : i32
    return %c0_i32, %c0_i32_0 : i32, i32
  }
  func.func @transform_19(%arg0: i32) -> (i32, i32) {
    %c0_i32 = arith.constant 0 : i32
    %c0_i32_0 = arith.constant 0 : i32
    %c0_i32_1 = arith.constant 0 : i32
    return %c0_i32, %c0_i32_0 : i32, i32
  }
  func.func @transform_20(%arg0: i32) -> (i32, i32) {
    %c0_i32 = arith.constant 0 : i32
    %c0_i32_0 = arith.constant 0 : i32
    %c0_i32_1 = arith.constant 0 : i32
    return %c0_i32, %c0_i32_0 : i32, i32
  }
  func.func @transform_21(%arg0: i32) -> (i32, i32, i32) {
    %c0_i32 = arith.constant 0 : i32
    %c0_i32_0 = arith.constant 0 : i32
    %c0_i32_1 = arith.constant 0 : i32
    return %arg0, %c0_i32, %c0_i32_0 : i32, i32, i32
  }
}

</mosaic_0001>

<bundles_post_ra>
// kernel: tpu_custom_call.1
= control target key start
LH: loop header
LB: loop body
LE: loop exit
PB: predicated region body
PF: predicated region fallthrough
CT: control target
= control target key end

     0   :  { %s4615_s0 = inlined_call_operand.hbm [shape: f32[2,8,32], index: 0, kind: input, shape index: {}]   ;;  %s4616_s1 = inlined_call_operand.vmem [shape: f32[2,12,32], index: 1, kind: input, shape index: {}]   ;;  %s4617_s2 = inlined_call_operand.hbm [shape: s32[2,8,8], index: 2, kind: input, shape index: {}]   ;;  %s4618_s3 = inlined_call_operand.hbm [shape: s32[2,1,12], index: 3, kind: input, shape index: {}]   ;;  %s4619_s4 = inlined_call_operand.vmem [shape: f32[32,96], index: 4, kind: input, shape index: {}]   ;;  %s4620_s5 = inlined_call_operand.vmem [shape: f32[32,32], index: 5, kind: input, shape index: {}]   ;;  %s4621_s6 = inlined_call_operand.vmem [shape: f32[1,32], index: 6, kind: input, shape index: {}]   ;;  %s4622_s7 = inlined_call_operand.vmem [shape: f32[32,32], index: 7, kind: input, shape index: {}]   ;;  %s4623_s8 = inlined_call_operand.vmem [shape: f32[32,64], index: 8, kind: input, shape index: {}]   ;;  %s4624_s9 = inlined_call_operand.hbm [shape: f32[32,32], index: 9, kind: input, shape index: {}]   ;;  %s4625_s10 = inlined_call_operand.hbm [shape: f32[1,32], index: 10, kind: input, shape index: {}]   ;;  %s4626_s11 = inlined_call_operand.vmem [shape: f32[32,64], index: 11, kind: input, shape index: {}]   ;;  %s4627_s12 = inlined_call_operand.vmem [shape: f32[1,64], index: 12, kind: input, shape index: {}]   ;;  %s4628_s13 = inlined_call_operand.vmem [shape: f32[64,32], index: 13, kind: input, shape index: {}]   ;;  %s4629_s14 = inlined_call_operand.vmem [shape: f32[1,32], index: 14, kind: input, shape index: {}]   ;;  %s4630_s15 = inlined_call_operand.vmem [shape: f32[1,32], index: 15, kind: input, shape index: {}]   ;;  %s4631_s16 = inlined_call_operand.vmem [shape: f32[1,32], index: 16, kind: input, shape index: {}]   ;;  %s4632_s17 = inlined_call_operand.vmem [shape: f32[1,32], index: 17, kind: input, shape index: {}]   ;;  %s4633_s18 = inlined_call_operand.vmem [shape: f32[1,32], index: 18, kind: input, shape index: {}]   ;;  %s4634_s19 = inlined_call_operand.vmem [shape: f32[1,32], index: 19, kind: input, shape index: {}]   ;;  %s4635_s20 = inlined_call_operand.vmem [shape: f32[1,32], index: 20, kind: input, shape index: {}]   ;;  %s4636_s21 = inlined_call_operand.hbm [shape: f32[2,8,32], index: 21, kind: output, shape index: {}]  }
   0x1   :  { %4670 = sst [smem:[#allocation23_spill]] %s4615_s0 }
   0x2   :  { %4671 = sst [smem:[#allocation24_spill]] %s4616_s1 }
   0x3   :  { %4672 = sst [smem:[#allocation25_spill]] %s4617_s2 }
   0x4   :  { %4673 = sst [smem:[#allocation26_spill]] %s4618_s3 }
   0x5   :  { %4674 = sst [smem:[#allocation27_spill]] %s4619_s4 }
   0x6   :  { %4675 = sst [smem:[#allocation28_spill]] %s4620_s5 }
   0x7   :  { %4676 = sst [smem:[#allocation29_spill]] %s4624_s9 }
   0x8   :  { %4677 = sst [smem:[#allocation30_spill]] %s4625_s10 }
   0x9   :  { %4678 = sst [smem:[#allocation31_spill]] %s4627_s12 }
   0xa   :  { %4679 = sst [smem:[#allocation32_spill]] %s4628_s13 }
   0xb   :  { %4680 = sst [smem:[#allocation33_spill]] %s4629_s14 }
   0xc   :  { %4681 = sst [smem:[#allocation34_spill]] %s4632_s17 }
   0xd   :  { %4682 = sst [smem:[#allocation35_spill]] %s4633_s18 }
   0xe   :  { %4683 = sst [smem:[#allocation36_spill]] %s4634_s19 }
   0xf   :  { %4684 = sst [smem:[#allocation37_spill]] %s4635_s20 }
  0x10   :  { %4685 = sst [smem:[#allocation38_spill]] %s4636_s21 }
  0x11   :  { %26 = vsyncpa [#allocation4], 0 }
  0x12   :  { %28 = vsyncpa [#allocation4 + $0x1], 0 }
  0x13   :  { %29 = vsyncpa [#allocation7], 0 }
  0x14   :  { %31 = vsyncpa [#allocation7 + $0x1], 0 }
  0x15   :  { %32 = vsyncpa [#allocation10], 0 }
  0x16   :  { %33 = vsyncpa [#allocation5], 0 }
  0x17   :  { %35 = vsyncpa [#allocation5 + $0x1], 0  ;;  %s3971_s2 = smov 0   ;;  %s3973_s25 = smov 0  }
  0x18   :  { %s3975_s26 = smov 0   ;;  %s3977_s27 = smov 0  }
  0x19 LB: > { %4686 = sst [smem:[#allocation17_spill]] %s3820_s2  ;;  %s3992_s3 = sadd.s32 4294967295, %s3832_s27   ;;  %s3832_s27 = sphi %s3977_s27, %s4742_s27   ;;  %s3828_s26 = sphi %s3975_s26, %s4744_s26   ;;  %s3824_s25 = sphi %s3973_s25, %s4746_s25   ;;  %s3820_s2 = sphi %s3971_s2, %s4745_s2  }
  0x1a   : > { %4687 = sst [smem:[#allocation18_spill]] %s3828_s26  ;;  %s3025_s28 = sadd.s32 4294967294, %s3832_s27  }
  0x1b   : > { %p61_p0 = scmp.ne.s32.totalorder %s3824_s25, %s3820_s2  ;;  %p4645_p1 = scmp.eq.s32.totalorder %s3992_s3, 0 }
  0x1c   : > { %p526_p3 = scmp.eq.s32.totalorder %s3025_s28, 1  ;;  %p3026_p5 = scmp.ge.s32.totalorder %s3832_s27, 1 }
  0x1d   : > { %p4001_p4 = por %p4645_p1, %p61_p0  ;;  %p533_p7 = scmp.lt.s32.totalorder %s3832_s27, 3 }
  0x1e   : > { %p4006_p6 = por %p526_p3, %p61_p0  ;;  %s3834_s30 = smov [#allocation9]  }
  0x1f   : > { %s4688_s29 = scalar_select %p4001_p4, 1, 0 }
  0x20   : > { %s4689_s0 = scalar_select %p4006_p6, 1, 0 }
  0x21   : > { %p4011_p8 = pnand %p3026_p5, %p533_p7  ;;  %s560_s5 = sshll.u32 %s3834_s30, 4  ;;  %s4015_s5 = int_to_ptr.vmem [resolvable:$true] %s560_s5 }
  0x22   : > { %4690 = sst [smem:[#allocation19_spill]] %s4689_s0  ;;  %s4027_s23 = sadd.s32 1, %s3832_s27  }
  0x23   : > { %s4691_s4 = scalar_select %p4011_p8, 1, 0 }
  0x24   : > { %p3457_p9 = pneg %p4011_p8  ;;  %4693 = sst [smem:[#allocation20_spill]] %s4027_s23 }
  0x25   : > { %s48_s1 = sadd.s32 1, %s3828_s26  ;;  %s45_s24 = ssub.s32 %s3832_s27, %s4027_s23 }
  0x26   : > { %p4022_p11 = pnand %p3457_p9, %p4645_p1  ;;  %s4694_s9 = sld [smem:[#allocation29_spill]] }
  0x28   : > { %s4692_s22 = scalar_select %p4022_p11, 1, 0 }
  0x29   : > { %p4653_p13 = pneg %p4022_p11 }
  0x2c   : > { %s3612_s30 = scalar_lea.hbm %s4694_s9, 512 }
  0x2d   : > { %p3613_p12 = scmp.ne.s32.totalorder %s4694_s9, %s3612_s30  ;;  %p3619_p5 = scmp.lt.u32.totalorder %s3612_s30, %s4694_s9 }
  0x2f   : > { %p3615_p0 = pnand %p4653_p13, %p3613_p12 }
  0x31   : > { %p3616_p3 = pneg %p3615_p0 }
  0x33   : > { %p3621_p7 = pnand %p3619_p5, %p3616_p3 }
  0x35   : > { %3624 = shalt.err (!%p3621_p7)
}
  0x36   : > { %s3625_s0 = scalar_lea.vmem %s4015_s5, 512  ;;  %p3633_p2 = scmp.lt.s32.totalorder %s4015_s5, %s4015_s5 }
  0x37   : > { %p3626_p9 = scmp.ne.s32.totalorder %s4015_s5, %s3625_s0  ;;  %p3634_p12 = scmp.lt.s32.totalorder %s3625_s0, %s3625_s0 }
  0x39   : > { %p3628_p10 = pnand %p3626_p9, %p4653_p13  ;;  %p3635_p0 = por %p3634_p12, %p3633_p2 }
  0x3b   : > { %p3629_p1 = pneg %p3628_p10 }
  0x3d   : > { %p3636_p6 = pnand %p3635_p0, %p3629_p1 }
  0x3f   : > { %3639 = shalt.err (!%p3636_p6)
}
  0x40   : > { %s3835_s19 = smov 128   ;;  %s3836_s20 = smov 8  }
  0x41   : > { %3460 = dma.hbm_to_vmem [thread:$0]  (!%p4022_p11), %s4694_s9, 512, %s4015_s5, [#allocation10], %s3835_s19, %s3835_s19, %s3836_s20  }
  0x42   : > { %p46_p1 = scmp.eq.s32.totalorder %s45_s24, 0  ;;  %p55_p2 = scmp.ne.s32.totalorder %s3828_s26, %s3824_s25 }
  0x43   : > { %p56_p6 = scmp.eq.s32.totalorder %s3832_s27, 0  ;;  %p3480_p10 = scmp.lt.s32.totalorder %s3832_s27, 2 }
  0x44   : > { %s4064_s28 = scalar_select %p46_p1, %s3828_s26, %s48_s1  }
  0x45   : > { %p57_p3 = por %p56_p6, %p55_p2  ;;  %p4696_p5 = scmp.eq.s32.totalorder %s3992_s3, 1 }
  0x46   : > { %4695 = sst [smem:[#allocation21_spill]] %s4064_s28  ;;  %s4073_s0 = sand.u32 1, %s3828_s26  }
  0x47   : > { %p4068_p7 = por %p4696_p5, %p55_p2  ;;  %s4652_s23 = sshll.u32 %s3832_s27, 7 }
  0x48   : > { %s4651_s14 = sshll.u32 %s4073_s0, 3  ;;  %p4077_p9 = pnand %p3480_p10, %p57_p3 }
  0x49   : > { %s4697_s30 = scalar_select %p4068_p7, 1, 0 }
  0x4a   : > { %s4699_s5 = scalar_select %p4077_p9, 1, 0 }
  0x4b   : > { %4698 = sst [smem:[#allocation22_spill]] %s4697_s30  ;;  %s641_s24 = sand.u32 1, %s3832_s27  }
  0x4c   : > { %s4700_s20 = sld [smem:[#allocation25_spill]]  ;;  %s645_s2 = scalar_lea.vmem [#allocation6], %s4651_s14 }
  0x4d   : > { %s652_s9 = sshll.u32 %s645_s2, 4  ;;  %s4093_s28 = scalar_lea.sflag [#allocation7], %s641_s24  ;;  %s4091_s9 = int_to_ptr.vmem [resolvable:$true] %s652_s9 }
  0x4e   : > { %p4099_p0 = pneg %p4077_p9 }
  0x50   : > { %s4701_s30 = scalar_select %p4099_p0, 1, 0 }
  0x52   : > { %s4087_s21 = scalar_lea.hbm %s4700_s20, %s4652_s23  ;;  %s3645_s14 = scalar_lea.hbm %s4700_s20, 256 }
  0x53   : > { %s3640_s26 = scalar_lea.hbm %s4087_s21, 128  ;;  %p3646_p6 = scmp.lt.u32.totalorder %s4087_s21, %s4700_s20 }
  0x54   : > { %p3641_p12 = scmp.ne.s32.totalorder %s4087_s21, %s3640_s26  ;;  %p3647_p10 = scmp.lt.u32.totalorder %s3645_s14, %s3640_s26 }
  0x55   : > { %p3649_p5 = scmp.lt.u32.totalorder %s3640_s26, %s4087_s21 }
  0x56   : > { %p3643_p1 = pnand %p4099_p0, %p3641_p12  ;;  %p3648_p3 = por %p3647_p10, %p3646_p6 }
  0x58   : > { %p3644_p2 = pneg %p3643_p1  ;;  %p3650_p13 = por %p3649_p5, %p3648_p3 }
  0x5a   : > { %p3651_p7 = pnand %p3650_p13, %p3644_p2 }
  0x5c   : > { %3654 = shalt.err (!%p3651_p7)
}
  0x5d   : > { %s3655_s24 = scalar_lea.vmem %s4091_s9, 128  ;;  %s3837_s1 = smov [#allocation6]  }
  0x5e   : > { %p3656_p12 = scmp.ne.s32.totalorder %s4091_s9, %s3655_s24  ;;  %s3660_s19 = sshll.u32 %s3837_s1, 4  ;;  %s3661_s19 = int_to_ptr.vmem [resolvable:$false] %s3660_s19 }
  0x5f   : > { %s3662_s23 = scalar_lea.vmem %s3661_s19, 256  ;;  %p3663_p8 = scmp.lt.s32.totalorder %s4091_s9, %s3661_s19 }
  0x60   : > { %p3658_p1 = pnand %p3656_p12, %p4099_p0  ;;  %p3664_p11 = scmp.lt.s32.totalorder %s3662_s23, %s3655_s24 }
  0x62   : > { %p3659_p4 = pneg %p3658_p1  ;;  %p3665_p6 = por %p3664_p11, %p3663_p8 }
  0x64   : > { %p3666_p10 = pnand %p3665_p6, %p3659_p4 }
  0x66   : > { %3669 = shalt.err (!%p3666_p10)
}
  0x67   : > { %3470 = dma.hbm_to_vmem [thread:$0]  (!%p4077_p9), %s4087_s21, 128, %s4091_s9, %s4093_s28  }
  0x68   : > { %s3838_s14 = smov [#allocation11]   ;;  %s4702_s10 = sld [smem:[#allocation30_spill]] }
  0x69   : > { %s574_s26 = sshll.u32 %s3838_s14, 4  ;;  %p4703_p4 = scmp.ne.s32.totalorder %s4692_s22, 0  ;;  %s575_s26 = int_to_ptr.vmem [resolvable:$true] %s574_s26 }
  0x6b   : > { %p4704_p11 = pneg %p4703_p4 }
  0x6e   : > { %s3670_s1 = scalar_lea.hbm %s4702_s10, 16 }
  0x6f   : > { %p3671_p8 = scmp.ne.s32.totalorder %s4702_s10, %s3670_s1  ;;  %p3677_p2 = scmp.lt.u32.totalorder %s3670_s1, %s4702_s10 }
  0x71   : > { %p3673_p13 = pnand %p3671_p8, %p4704_p11 }
  0x73   : > { %p3674_p7 = pneg %p3673_p13 }
  0x75   : > { %p3679_p3 = pnand %p3677_p2, %p3674_p7 }
  0x77   : > { %3682 = shalt.err (!%p3679_p3)
}
  0x78   : > { %s3683_s9 = scalar_lea.vmem %s575_s26, 16  ;;  %p4705_p12 = pmov %p4704_p11 }
  0x79   : > { %p3684_p5 = scmp.ne.s32.totalorder %s575_s26, %s3683_s9  ;;  %s3690_s20 = scalar_lea.vmem %s575_s26, 32 }
  0x7a   : > { %p3691_p10 = scmp.lt.s32.totalorder %s575_s26, %s575_s26  ;;  %p3692_p9 = scmp.lt.s32.totalorder %s3690_s20, %s3683_s9 }
  0x7b   : > { %p3686_p1 = pnand %p3684_p5, %p4705_p12 }
  0x7c   : > { %p3693_p0 = por %p3692_p9, %p3691_p10 }
  0x7d   : > { %p3687_p6 = pneg %p3686_p1 }
  0x7f   : > { %p3694_p8 = pnand %p3693_p0, %p3687_p6 }
  0x81   : > { %3697 = shalt.err (!%p3694_p8)
}
  0x82   : > { %3463 = dma.hbm_to_vmem [thread:$0]  (!%p4703_p4), %s4702_s10, 16, %s575_s26, [#allocation10]  }
  0x83   : > { %s4706_s14 = sshll.u32 %s3832_s27, 7  ;;  %s4707_s19 = sld [smem:[#allocation23_spill]] }
  0x84   : > { %s4708_s23 = sshll.u32 %s4073_s0, 3  ;;  %s616_s20 = scalar_lea.sflag [#allocation4], %s4073_s0 }
  0x85   : > { %s619_s22 = scalar_lea.vmem [#allocation3], %s4708_s23  ;;  %p4709_p0 = scmp.ne.s32.totalorder %s4701_s30, 0 }
  0x86   : > { %s626_s9 = sshll.u32 %s619_s22, 4  ;;  %s627_s9 = int_to_ptr.vmem [resolvable:$true] %s626_s9 }
  0x89   : > { %s4148_s24 = scalar_lea.hbm %s4707_s19, %s4706_s14  ;;  %s3703_s2 = scalar_lea.hbm %s4707_s19, 256 }
  0x8a   : > { %s3698_s12 = scalar_lea.hbm %s4148_s24, 128  ;;  %p3704_p13 = scmp.lt.u32.totalorder %s4148_s24, %s4707_s19 }
  0x8b   : > { %p3699_p9 = scmp.ne.s32.totalorder %s4148_s24, %s3698_s12  ;;  %p3705_p7 = scmp.lt.u32.totalorder %s3703_s2, %s3698_s12 }
  0x8c   : > { %p3707_p3 = scmp.lt.u32.totalorder %s3698_s12, %s4148_s24 }
  0x8d   : > { %p3701_p11 = pnand %p3699_p9, %p4709_p0  ;;  %p3706_p2 = por %p3705_p7, %p3704_p13 }
  0x8f   : > { %p3702_p4 = pneg %p3701_p11  ;;  %p3708_p5 = por %p3707_p3, %p3706_p2 }
  0x91   : > { %p3709_p12 = pnand %p3708_p5, %p3702_p4 }
  0x93   : > { %3712 = shalt.err (!%p3709_p12)
}
  0x94   : > { %s3713_s23 = scalar_lea.vmem %s627_s9, 128  ;;  %s3839_s22 = smov [#allocation3]  }
  0x95   : > { %p3714_p1 = scmp.ne.s32.totalorder %s627_s9, %s3713_s23  ;;  %s3718_s10 = sshll.u32 %s3839_s22, 4  ;;  %s3719_s10 = int_to_ptr.vmem [resolvable:$false] %s3718_s10 }
  0x96   : > { %s3720_s26 = scalar_lea.vmem %s3719_s10, 256  ;;  %p3721_p8 = scmp.lt.s32.totalorder %s627_s9, %s3719_s10 }
  0x97   : > { %p3716_p6 = pnand %p3714_p1, %p4709_p0  ;;  %p3722_p9 = scmp.lt.s32.totalorder %s3720_s26, %s3713_s23 }
  0x99   : > { %p3717_p10 = pneg %p3716_p6  ;;  %p3723_p11 = por %p3722_p9, %p3721_p8 }
  0x9b   : > { %p3724_p7 = pnand %p3723_p11, %p3717_p10 }
  0x9d   : > { %3727 = shalt.err (!%p3724_p7)
}
  0x9e   : > { %p4710_p13 = scmp.ne.s32.totalorder %s4699_s5, 0  ;;  %s3034_s12 = sshll.u32 %s3832_s27, 4 }
  0x9f   : > { %s662_s21 = scalar_lea.vmem [#allocation8], %s4073_s0  ;;  %s4711_s22 = sld [smem:[#allocation26_spill]] }
  0xa0   : > { %3467 = dma.hbm_to_vmem [thread:$0]  (!%p4710_p13), %s4148_s24, 128, %s627_s9, %s616_s20  }
  0xa1   : > { %s669_s2 = sshll.u32 %s662_s21, 4  ;;  %s670_s2 = int_to_ptr.vmem [resolvable:$true] %s669_s2 }
  0xa5   : > { %s667_s19 = scalar_lea.hbm %s4711_s22, %s3034_s12  ;;  %s3733_s18 = scalar_lea.hbm %s4711_s22, 32 }
  0xa6   : > { %s3728_s10 = scalar_lea.hbm %s667_s19, 16  ;;  %p3734_p5 = scmp.lt.u32.totalorder %s667_s19, %s4711_s22 }
  0xa7   : > { %p3729_p4 = scmp.ne.s32.totalorder %s667_s19, %s3728_s10  ;;  %p3735_p12 = scmp.lt.u32.totalorder %s3733_s18, %s3728_s10 }
  0xa8   : > { %p3737_p6 = scmp.lt.u32.totalorder %s3728_s10, %s667_s19 }
  0xa9   : > { %p3731_p2 = pnand %p3729_p4, %p4709_p0  ;;  %p3736_p1 = por %p3735_p12, %p3734_p5 }
  0xab   : > { %p3732_p3 = pneg %p3731_p2  ;;  %p3738_p10 = por %p3737_p6, %p3736_p1 }
  0xad   : > { %p3739_p8 = pnand %p3738_p10, %p3732_p3 }
  0xaf   : > { %3742 = shalt.err (!%p3739_p8)
}
  0xb0   : > { %s3743_s0 = scalar_lea.vmem %s670_s2, 16  ;;  %s3840_s24 = smov [#allocation8]  }
  0xb1   : > { %p3744_p9 = scmp.ne.s32.totalorder %s670_s2, %s3743_s0  ;;  %s3748_s9 = sshll.u32 %s3840_s24, 4  ;;  %s3749_s9 = int_to_ptr.vmem [resolvable:$false] %s3748_s9 }
  0xb2   : > { %s3750_s20 = scalar_lea.vmem %s3749_s9, 32  ;;  %p3751_p4 = scmp.lt.s32.totalorder %s670_s2, %s3749_s9 }
  0xb3   : > { %p3746_p11 = pnand %p3744_p9, %p4709_p0  ;;  %p3752_p2 = scmp.lt.s32.totalorder %s3750_s20, %s3743_s0 }
  0xb5   : > { %p3747_p7 = pneg %p3746_p11  ;;  %p3753_p13 = por %p3752_p2, %p3751_p4 }
  0xb7   : > { %p3754_p5 = pnand %p3753_p13, %p3747_p7 }
  0xb9   : > { %3757 = shalt.err (!%p3754_p5)
}
  0xba   : > { %p4712_p12 = scmp.ne.s32.totalorder %s4699_s5, 0  ;;  %p4713_p3 = scmp.ne.s32.totalorder %s4691_s4, 0 }
  0xbb   : > { %s4191_s13 = sand.u32 (!%p4713_p3), 1, %s3824_s25   ;;  %p4714_p0 = scmp.ne.s32.totalorder (!%p4713_p3), %s4688_s29, 0 }
  0xbc   : > { %3473 = dma.hbm_to_vmem [thread:$0]  (!%p4712_p12), %s667_s19, 16, %s670_s2, %s4093_s28  }
  0xbd   : > { %678 = sbr.rel (%p4713_p3) target bundleno = 5547 (0x15ab), region = 104  ;;  %s4194_s17 = sshll.u32 (!%p4713_p3), %s4191_s13, 3 }
  0xbe   : > { %s681_s18 = scalar_lea.sflag (!%p4713_p3), [#allocation4], %s4191_s13  ;;  %s684_s30 = scalar_lea.vmem (!%p4713_p3), [#allocation3], %s4194_s17 }
  0xc4   : > { %3803 = dma.done.wait (%p4714_p0), %s681_s18, 128  }
  0xc5   : > { %3805 = vsyncadd (%p4714_p0), %s681_s18, 4294967168  ;;  %s689_s4 = sand.u32 1, %s3992_s3   ;;  %s693_s5 = scalar_lea.vmem [#allocation6], %s4194_s17 }
  0xc6   : > { %s690_s28 = scalar_lea.sflag [#allocation7], %s689_s4 }
  0xc7   : > { %3807 = dma.done.wait (%p4714_p0), %s690_s28, 144  }
  0xc8   : > { %3809 = vsyncadd (%p4714_p0), %s690_s28, 4294967152  ;;  %s701_s19 = scalar_lea.vmem [#allocation8], %s4191_s13  ;;  %p4715_p13 = scmp.eq.s32.totalorder %s3992_s3, 0 }
  0xca   : > { %3811 = dma.done.wait (%p4715_p13), [#allocation10], 528   ;;  %p4716_p1 = pmov %p4715_p13 }
  0xcb   : > { %v3841_v0 = vmov 0.0|0.0   ;;  %vm3842_vm0 = vmmov 0   ;;  %v3843_v1 = vmov 0.0   ;;  %s4717_s21 = sld [smem:[#allocation27_spill]]  ;;  %v4232_v8 = vld [vmem:[%s684_s30] sm:$0xff]  ;;  %vm796_vm1 = vcmask 261120  }
  0xcc   : > { %3813 = vsyncadd (%p4716_p1), [#allocation10], 4294966768  ;;  %3359 = vmatprep.subr.bf16.mxu1 %v3841_v0  ;;  %3186 = vmatprep.mubr.msk.f32.mxu1 %vm3842_vm0, %v3843_v1  ;;  %s3844_s0 = smov 120   ;;  %s3845_s24 = smov 96   ;;  %vm873_vm2 = vcmask 64512   ;;  %v790_v18 = vld [vmem:[%s693_s5] sm:$0xff] }
  0xcd   : > { %3199 = vmatprep.subr.mxu0 %v3843_v1  ;;  %3201 = vmatprep.mubr.msk.f32.mxu0 %vm3842_vm0, %v3843_v1  ;;  %s3846_s9 = smov 80   ;;  %s3847_s20 = smov 88   ;;  %vm948_vm3 = vcmp.ne.s32.totalorder %v790_v18, 0  ;;  %vm1208_vm4 = vcmask 130112   ;;  %vm1380_vm5 = vcmask 195712   ;;  %vm1552_vm6 = vcmask 261312   ;;  %vm4387_vm7 = vmpackc.low %vm873_vm2, %vm873_vm2 }
  0xce   : > { %s4667_s18 = smov 72   ;;  %s3849_s30 = smov 112   ;;  %vm1919_vm10 = vcmask 97280   ;;  %vm1939_vm11 = vcmask 1043456   ;;  %vm3859_vm12 = vmmov 1   ;;  %vm2765_vm14 = vcmask 523264  }
  0xcf   : > { %s3850_s4 = smov 104   ;;  %s3851_s28 = smov 56   ;;  %vm4430_vm13 = vmpackc.low %vm1939_vm11, %vm3859_vm12 }
  0xd0   : > { %s3852_s5 = smov 64   ;;  %s3853_s29 = smov 48  }
  0xd1   : > { %v792_v2 = vld [vmem:[%s4717_s21] sm:$0xff]  ;;  %v793_v3 = vld [vmem:[%s4717_s21 + $0x8] sm:$0xff]  ;;  %v794_v4 = vld [vmem:[%s4717_s21 + $0x10] sm:$0xff]  ;;  %s3854_s12 = smov 40   ;;  %s4669_s2 = smov 8  }
  0xd2   : > { %v3360_v5 = vpack.c.bf16 %v793_v3, %v792_v2  ;;  %v795_v6 = vld [vmem:[%s4717_s21 + $0x18] sm:$0xff]  ;;  %s4718_s10 = sld [smem:[#allocation28_spill]]  ;;  %s4668_s14 = smov 16  }
  0xd3   : > { %v3363_v7 = vpack.c.bf16 %v795_v6, %v794_v4  ;;  %s4666_s1 = smov 24   ;;  %p782_p6 = scmp.lt.s32.totalorder %s3992_s3, 1 }
  0xd4   : > { %3361 = vmatpush3.bf16.msra.mxu1 %v3360_v5  ;;  %s4735_s23 = sld [smem:[#allocation37_spill]]  ;;  %s3094_s26 = sshll.u32 %s3992_s3, 7 }
  0xd5   : > { %3362 = vmatprep.subr.bf16.mxu1 %v3841_v0 }
  0xd8   : > { %3364 = vmatpush3.bf16.msra.mxu1 %v3363_v7  ;;  %v1558_v18 = vld [vmem:[%s4718_s10 + $0x18] sm:$0xff] }
  0xd9   : > { %3189 = vmatprep.subr.mxu1 %v3843_v1 }
  0xdb   : > { %3187 = vmatmul.mubr.msk.f32.vlgmr.msra.gmra.mrb[0].mxu1 %vm796_vm1, %v4232_v8 }
  0xdc   : > { %3191 = vmatprep.mubr.msk.f32.mxu1 %vm3842_vm0, %v3843_v1 }
 0x1ae   : > { %v4239_v9 = vpop.f32.mrb[0].mxu1 }
 0x1af   : > { %1038 = vrot.lane.b32.xlu1 %v4239_v9, %s3844_s0  ;;  %871 = vrot.lane.b32.xlu0 %v4239_v9, %s3845_s24  ;;  %v3188_v10 = vpop.f32.mrb[1].mxu1 }
 0x1b3   : > { %1212 = vrot.lane.b32.xlu1 %v4239_v9, %s3846_s9  ;;  %1040 = vrot.lane.b32.xlu0 %v4239_v9, %s3847_s20 }
 0x1b7   : > { %1384 = vrot.lane.b32.xlu1 %v4239_v9, %s4667_s18  ;;  %1210 = vrot.lane.b32.xlu0 %v4239_v9, %s3849_s30 }
 0x1bb   : > { %1382 = vrot.lane.b32.xlu0 %v4239_v9, %s3850_s4 }
 0x221   : > { %v1039_v11 = vpop.permute.xlu1 %1038  ;;  %v872_v12 = vpop.permute.xlu0 %871 }
 0x222   : > { %3190 = vmatpush3.xpose.msk.msra.mxu1 %vm873_vm2, %v872_v12 }
 0x223   : > { %3194 = vmatprep.subr.mxu1 %v3843_v1 }
 0x225   : > { %3192 = vmatmul.mubr.msk.f32.vlgmr.msra.gmra.mrb[2].mxu1 %vm873_vm2, %v4239_v9  ;;  %v1041_v13 = vpop.permute.xlu0 %1040  ;;  %v1213_v14 = vpop.permute.xlu1 %1212 }
 0x226   : > { %3200 = vmatpush3.xpose.msk.msra.mxu0 %vm873_vm2, %v1041_v13  ;;  %3196 = vmatprep.mubr.msk.f32.mxu1 %vm3842_vm0, %v3843_v1 }
 0x227   : > { %3209 = vmatprep.subr.mxu0 %v3843_v1 }
 0x229   : > { %3202 = vmatmul.mubr.msk.f32.vlgmr.msra.gmra.mrb[0].mxu0 %vm873_vm2, %v1039_v11  ;;  %v1211_v15 = vpop.permute.xlu0 %1210  ;;  %v1385_v16 = vpop.permute.xlu1 %1384 }
 0x22a   : > { %3210 = vmatpush3.xpose.msk.msra.mxu0 %vm873_vm2, %v1213_v14  ;;  %3211 = vmatprep.mubr.msk.f32.mxu0 %vm3842_vm0, %v3843_v1  ;;  %v1555_v14 = vld [vmem:[%s4718_s10] sm:$0xff] }
 0x22b   : > { %3219 = vmatprep.subr.mxu0 %v3843_v1 }
 0x22d   : > { %3212 = vmatmul.mubr.msk.f32.vlgmr.msra.gmra.mrb[2].mxu0 %vm873_vm2, %v1211_v15  ;;  %v1383_v17 = vpop.permute.xlu0 %1382  ;;  %v1556_v15 = vld [vmem:[%s4718_s10 + $0x8] sm:$0xff] }
 0x22e   : > { %3220 = vmatpush3.xpose.msk.msra.mxu0 %vm873_vm2, %v1385_v16  ;;  %3221 = vmatprep.mubr.msk.f32.mxu0 %vm3842_vm0, %v3843_v1  ;;  %v3366_v16 = vpack.c.bf16 %v1556_v15, %v1555_v14 }
 0x22f   : > { %3365 = vmatprep.subr.bf16.mxu0 %v3841_v0 }
 0x231   : > { %3222 = vmatmul.mubr.msk.f32.vlgmr.msra.gmra.mrb[4].mxu0 %vm873_vm2, %v1383_v17  ;;  %v1557_v17 = vld [vmem:[%s4718_s10 + $0x10] sm:$0xff] }
 0x232   : > { %3237 = vmatprep.mubr.msk.f32.mxu0 %vm3842_vm0, %v3843_v1  ;;  %3367 = vmatpush3.bf16.msra.mxu0 %v3366_v16  ;;  %v3858_v16 = vmov 0  }
 0x233   : > { %3368 = vmatprep.subr.bf16.mxu0 %v3841_v0 }
 0x2f8   : > { %v944_v19 = vpop.f32.mrb[2].mxu1 }
 0x2f9   : > { %v949_v20 = vsel %vm948_vm3, -1e+30, %v944_v19  ;;  %v3193_v21 = vpop.f32.mrb[3].mxu1  ;;  %v3369_v19 = vpack.c.bf16 %v1558_v18, %v1557_v17 }
 0x2fa   : > { %v950_v22 = vsel %vm873_vm2, %v949_v20, -inf }
 0x2fb   : > { %951 = vmax.xlane.f32.xlu1 %v950_v22  ;;  %3370 = vmatpush3.bf16.msra.mxu0 %v3369_v19 }
 0x2fc   : > { %v1112_v23 = vpop.f32.mrb[0].mxu0 }
 0x2fd   : > { %v1116_v24 = vsel %vm948_vm3, -1e+30, %v1112_v23  ;;  %v3203_v25 = vpop.f32.mrb[1].mxu0 }
 0x2fe   : > { %v1117_v26 = vsel %vm873_vm2, %v1116_v24, -inf }
 0x2ff   : > { %1118 = vmax.xlane.f32.xlu0 %v1117_v26 }
 0x300   : > { %v1284_v27 = vpop.f32.mrb[2].mxu0 }
 0x301   : > { %v1288_v28 = vsel %vm948_vm3, -1e+30, %v1284_v27  ;;  %v3213_v29 = vpop.f32.mrb[3].mxu0 }
 0x302   : > { %v1289_v30 = vsel %vm873_vm2, %v1288_v28, -inf }
 0x303   : > { %1290 = vmax.xlane.f32.xlu0 %v1289_v30 }
 0x304   : > { %v1456_v31 = vpop.f32.mrb[4].mxu0 }
 0x305   : > { %v1460_v32 = vsel %vm948_vm3, -1e+30, %v1456_v31  ;;  %v3223_v33 = vpop.f32.mrb[5].mxu0 }
 0x306   : > { %v1461_v34 = vsel %vm873_vm2, %v1460_v32, -inf }
 0x307   : > { %1462 = vmax.xlane.f32.xlu1 %v1461_v34  ;;  %v1747_v34 = vld [vmem:[%s4623_s8] sm:$0xff] }
 0x318   : > { %1128 = vrot.lane.b32.xlu1 %v4239_v9, %s3851_s28  ;;  %s4732_s28 = sld [smem:[#allocation33_spill]] }
 0x388   : > { %v952_v35 = vpop.xlane.xlu1 %951 }
 0x389   : > { %v953_v36 = vsub.f32 %v949_v20, %v952_v35  ;;  %v1748_v35 = vld [vmem:[%s4623_s8 + $0x8] sm:$0xff] }
 0x38b   : > { %v954_v37 = vmul.f32 1.442695, %v953_v36  ;;  %v3377_v36 = vpack.c.bf16 %v1748_v35, %v1747_v34 }
 0x38c   : > { %v1119_v38 = vpop.xlane.xlu0 %1118 }
 0x38d   : > { %3574 = vpow2.f32 %v954_v37  ;;  %v1120_v39 = vsub.f32 %v1116_v24, %v1119_v38  ;;  %3378 = vmatprep.subr.bf16.mxu0 %v3377_v36 }
 0x38f   : > { %v1121_v40 = vmul.f32 1.442695, %v1120_v39 }
 0x390   : > { %v1291_v50 = vpop.xlane.xlu0 %1290 }
 0x391   : > { %3576 = vpow2.f32 %v1121_v40  ;;  %v1292_v51 = vsub.f32 %v1288_v28, %v1291_v50  ;;  %v3056_v28 = vld [vmem:[%s4621_s6] ss:$0 sm:$0xff]  ;;  %v1673_v50 = vld [vmem:[%s4622_s7 + $0x18] sm:$0xff] }
 0x393   : > { %v1293_v52 = vmul.f32 1.442695, %v1292_v51 }
 0x394   : > { %v1463_v41 = vpop.xlane.xlu1 %1462 }
 0x395   : > { %v1464_v42 = vsub.f32 %v1460_v32, %v1463_v41  ;;  %v1749_v41 = vld [vmem:[%s4623_s8 + $0x10] sm:$0xff] }
 0x397   : > { %v3575_v43 = vpop.eup %3574  ;;  %v1465_v44 = vmul.f32 1.442695, %v1464_v42  ;;  %v1750_v42 = vld [vmem:[%s4623_s8 + $0x18] sm:$0xff] }
 0x398   : > { %v956_v45 = vsel %vm873_vm2, %v3575_v43, 0.0  ;;  %v1129_v55 = vpop.permute.xlu1 %1128 }
 0x399   : > { %3578 = vpow2.f32 %v1465_v44  ;;  %957 = vadd.xlane.f32.xlu0 %v956_v45 }
 0x39a   : > { %3580 = vpow2.f32 %v1293_v52 }
 0x39b   : > { %v3577_v46 = vpop.eup %3576 }
 0x39c   : > { %v1123_v47 = vsel %vm873_vm2, %v3577_v46, 0.0 }
 0x39d   : > { %1124 = vadd.xlane.f32.xlu1 %v1123_v47  ;;  %v1671_v47 = vld [vmem:[%s4622_s7 + $0x8] sm:$0xff] }
 0x3a3   : > { %v3579_v48 = vpop.eup %3578 }
 0x3a4   : > { %v1467_v49 = vsel %vm873_vm2, %v3579_v48, 0.0  ;;  %v3581_v53 = vpop.eup %3580 }
 0x3a5   : > { %1468 = vadd.xlane.f32.xlu1 %v1467_v49  ;;  %v1295_v54 = vsel %vm873_vm2, %v3581_v53, 0.0  ;;  %v1672_v49 = vld [vmem:[%s4622_s7 + $0x10] sm:$0xff] }
 0x3a6   : > { %v3375_v51 = vpack.c.bf16 %v1673_v50, %v1672_v49 }
 0x3af   : > { %961 = vrot.lane.b32.xlu0 %v4239_v9, %s3852_s5  ;;  %s4733_s5 = sld [smem:[#allocation22_spill]] }
 0x3b5   : > { %p4737_p8 = scmp.ne.s32.totalorder %s4733_s5, 0 }
 0x3b6   : > { %1300 = vrot.lane.b32.xlu1 %v4239_v9, %s3853_s29  ;;  %s783_s29 = scalar_select %p782_p6, %s3992_s3, 1 }
 0x3b7   : > { %s3860_s3 = smov [#allocation12]  }
 0x3ce   : > { %1296 = vadd.xlane.f32.xlu0 %v1295_v54 }
 0x3e4   : > { %1472 = vrot.lane.b32.xlu0 %v4239_v9, %s3854_s12  ;;  %s3097_s12 = sshll.u32 %s783_s29, 4  ;;  %s4730_s29 = sld [smem:[#allocation35_spill]] }
 0x426   : > { %v958_v56 = vpop.xlane.xlu0 %957 }
 0x427   : > { %3582 = vrcp.f32 %v958_v56  ;;  %v3058_v56 = vld [vmem:[%s4630_s15] ss:$0 sm:$0xff] }
 0x42a   : > { %v962_v57 = vpop.permute.xlu0 %961  ;;  %v1125_v58 = vpop.xlane.xlu1 %1124 }
 0x42b   : > { %3584 = vrcp.f32 %v1125_v58  ;;  %3195 = vmatpush3.msra.mxu1 %v962_v57  ;;  %v3059_v58 = vld [vmem:[%s4631_s16] ss:$0 sm:$0xff] }
 0x42c   : > { %3204 = vmatprep.subr.mxu1 %v3843_v1 }
 0x431   : > { %v3583_v59 = vpop.eup %3582 }
 0x432   : > { %v960_v60 = vmul.f32 %v3583_v59, %v3575_v43  ;;  %v1469_v61 = vpop.xlane.xlu1 %1468  ;;  %v3381_v43 = vpack.c.bf16 %v1750_v42, %v1749_v41 }
 0x434   : > { %3197 = vmatmul.mubr.msk.f32.vlgmr.msra.gmra.mrb[4].mxu1 %vm873_vm2, %v960_v60 }
 0x435   : > { %v3585_v62 = vpop.eup %3584  ;;  %3205 = vmatpush3.msra.mxu1 %v1129_v55  ;;  %3206 = vmatprep.mubr.msk.f32.mxu1 %vm3842_vm0, %v3843_v1 }
 0x436   : > { %v1127_v63 = vmul.f32 %v3585_v62, %v3577_v46  ;;  %v1301_v2 = vpop.permute.xlu1 %1300  ;;  %3214 = vmatprep.subr.mxu1 %v3843_v1  ;;  %v1670_v46 = vld [vmem:[%s4622_s7] sm:$0xff] }
 0x438   : > { %3207 = vmatmul.mubr.msk.f32.vlgmr.msra.gmra.mrb[6].mxu1 %vm873_vm2, %v1127_v63 }
 0x439   : > { %3215 = vmatpush3.msra.mxu1 %v1301_v2  ;;  %3216 = vmatprep.mubr.msk.f32.mxu1 %vm3842_vm0, %v3843_v1 }
 0x43a   : > { %3224 = vmatprep.subr.mxu1 %v3843_v1 }
 0x45b   : > { %v1297_v3 = vpop.xlane.xlu0 %1296 }
 0x45c   : > { %3586 = vrcp.f32 %v1297_v3 }
 0x45d   : > { %3588 = vrcp.f32 %v1469_v61 }
 0x45f   : > { %v1473_v7 = vpop.permute.xlu0 %1472 }
 0x466   : > { %v3587_v4 = vpop.eup %3586 }
 0x467   : > { %v1299_v5 = vmul.f32 %v3587_v4, %v3581_v53  ;;  %v3589_v6 = vpop.eup %3588 }
 0x468   : > { %v1471_v9 = vmul.f32 %v3589_v6, %v3579_v48  ;;  %v3372_v48 = vpack.c.bf16 %v1671_v47, %v1670_v46 }
 0x469   : > { %3217 = vmatmul.mubr.msk.f32.vlgmr.msra.gmra.mrb[8].mxu1 %vm873_vm2, %v1299_v5 }
 0x46a   : > { %3225 = vmatpush3.msra.mxu1 %v1473_v7  ;;  %3226 = vmatprep.mubr.msk.f32.mxu1 %vm3842_vm0, %v3843_v1 }
 0x46b   : > { %3371 = vmatprep.subr.bf16.mxu1 %v3841_v0 }
 0x46d   : > { %3227 = vmatmul.mubr.msk.f32.vlgmr.msra.gmra.mrb[10].mxu1 %vm873_vm2, %v1471_v9 }
 0x46e   : > { %3248 = vmatprep.mubr.msk.f32.mxu1 %vm3842_vm0, %v3843_v1  ;;  %3373 = vmatpush3.bf16.msra.mxu1 %v3372_v48 }
 0x46f   : > { %3374 = vmatprep.subr.bf16.mxu1 %v3841_v0 }
 0x472   : > { %3376 = vmatpush3.bf16.msra.mxu1 %v3375_v51 }
 0x473   : > { %3385 = vmatprep.subr.bf16.mxu1 %v3841_v0 }
 0x507   : > { %v1033_v10 = vpop.f32.mrb[4].mxu1 }
 0x508   : > { %1037 = vst.msk [vmem:[#allocation2] sm:$0xff] %vm873_vm2, %v1033_v10  ;;  %v3198_v11 = vpop.f32.mrb[5].mxu1 }
 0x50b   : > { %v1200_v12 = vpop.f32.mrb[6].mxu1 }
 0x50c   : > { %1205 = vrot.lane.b32.xlu1 %v1200_v12, %s4669_s2  ;;  %v3208_v13 = vpop.f32.mrb[7].mxu1  ;;  %v1913_v12 = vlaneseq }
 0x50d   : > { %v791_v13 = vld [vmem:[%s701_s19] sm:$0x1]  ;;  %s4724_s19 = smov 8  }
 0x50e   : > { %v1914_v14 = vshrl.u32 %v1913_v12, 7  ;;  %vm1911_vm8 = vcmp.ne.s32.totalorder %v791_v13, 0 }
 0x50f   : > { %v1912_v17 = vsel %vm1911_vm8, 1, %v3858_v16 }
 0x510   : > { %v1915_v15 = vsub.s32 0, %v1914_v14 }
 0x512   : > { %v4414_v18 = vrot.slane %v1912_v17, %v1915_v15 }
 0x514   : > { %vm1917_vm9 = vcmp.eq.s32.totalorder %v4414_v18, 1 }
 0x53c   : > { %v1372_v20 = vpop.f32.mrb[8].mxu1 }
 0x53d   : > { %1377 = vrot.lane.b32.xlu0 %v1372_v20, %s4668_s14  ;;  %v3218_v21 = vpop.f32.mrb[9].mxu1  ;;  %s4719_s14 = sld [smem:[#allocation24_spill]] }
 0x540   : > { %v1544_v22 = vpop.f32.mrb[10].mxu1 }
 0x541   : > { %1549 = vrot.lane.b32.xlu1 %v1544_v22, %s4666_s1  ;;  %v3228_v23 = vpop.f32.mrb[11].mxu1 }
 0x543   : > { %s786_s2 = scalar_lea.vmem %s4719_s14, %s3097_s12  ;;  %s4728_s12 = sld [smem:[#allocation32_spill]] }
 0x544   : > { %v788_v44 = vld [vmem:[%s786_s2] sm:$0xff]  ;;  %v789_v45 = vld [vmem:[%s786_s2 + $0x8] sm:$0xf]  ;;  %s4729_s14 = sld [smem:[#allocation34_spill]]  ;;  %s4734_s2 = sld [smem:[#allocation36_spill]] }
 0x57e   : > { %v1206_v24 = vpop.permute.xlu1 %1205 }
 0x57f   : > { %1209 = vst.msk [vmem:[#allocation2] sm:$0xff] %vm1208_vm4, %v1206_v24 }
 0x5af   : > { %v1378_v25 = vpop.permute.xlu0 %1377 }
 0x5b0   : > { %1381 = vst.msk [vmem:[#allocation2] sm:$0xff] %vm1380_vm5, %v1378_v25 }
 0x5b3   : > { %v1550_v26 = vpop.permute.xlu1 %1549 }
 0x5b4   : > { %1553 = vst.msk [vmem:[#allocation2] sm:$0xff] %vm1552_vm6, %v1550_v26 }
 0x5bb   : > { %v1554_v27 = vld [vmem:[#allocation2] sm:$0xff] }
 0x5bc   : > { %3238 = vmatmul.mubr.msk.f32.vlgmr.msra.gmra.mrb[6].mxu0 %vm796_vm1, %v1554_v27 }
 0x5bd   : > { %3380 = vmatpush3.bf16.msra.mxu0 %v3377_v36  ;;  %3259 = vmatprep.mubr.msk.f32.mxu0 %vm796_vm1, %v788_v44 }
 0x5be   : > { %3382 = vmatprep.subr.bf16.mxu0 %v3381_v43 }
 0x5c1   : > { %3384 = vmatpush3.bf16.msra.mxu0 %v3381_v43 }
 0x5c2   : > { %3389 = vmatprep.subr.bf16.mxu0 %v3841_v0 }
 0x5c4   : > { %3260 = vmatmul.mubr.msk.f32.vlgmr.msra.gmra.mrb[8].mxu0 %vm796_vm1, %v789_v45 }
 0x5c5   : > { %3273 = vmatprep.mubr.msk.f32.mxu0 %vm3842_vm0, %v3843_v1 }
 0x68f   : > { %v1635_v29 = vpop.f32.mrb[6].mxu0 }
 0x690   : > { %v1636_v30 = vadd.f32 %v3056_v28, %v1635_v29  ;;  %v3239_v31 = vpop.f32.mrb[7].mxu0 }
 0x692   : > { %v1639_v32 = vadd.f32 %v1636_v30, %v4232_v8 }
 0x694   : > { %v1640_v33 = vsel %vm796_vm1, %v1639_v32, 0.0 }
 0x695   : > { %1641 = vadd.xlane.f32.xlu0 %v1640_v33 }
 0x697   : > { %v3261_v61 = vpop.f32.mrb[8].mxu0 }
 0x698   : > { %v1823_v62 = vpop.f32.mrb[9].mxu0 }
 0x699   : > { %v4391_v2 = vpack.i.bf16 %v3261_v61, %v1823_v62  ;;  %v3386_v3 = vpack.c.bf16 %v3261_v61, %v1823_v62 }
 0x6ab   : > { %3540 = vrot.lane.b32.xlu0 %v4391_v2, %s3844_s0 }
 0x722   : > { %v1642_v37 = vpop.xlane.xlu0 %1641 }
 0x723   : > { %v1644_v38 = vmul.f32 0.03125, %v1642_v37 }
 0x725   : > { %v1645_v39 = vsub.f32 %v1639_v32, %v1644_v38 }
 0x726   : > { %v3541_v4 = vpop.permute.xlu0 %3540 }
 0x727   : > { %v1646_v40 = vmul.f32 %v1645_v39, %v1645_v39  ;;  %v3543_v5 = vunpack.i.h.bf16 %v3541_v4  ;;  %v3542_v6 = vunpack.i.l.bf16 %v3541_v4 }
 0x729   : > { %v1647_v8 = vsel %vm796_vm1, %v1646_v40, 0.0  ;;  %v3394_v7 = vpack.c.bf16 %v3543_v5, %v3542_v6 }
 0x72a   : > { %1648 = vadd.xlane.f32.xlu1 %v1647_v8 }
 0x7b7   : > { %v1649_v52 = vpop.xlane.xlu1 %1648 }
 0x7b8   : > { %v1650_v53 = vmul.f32 0.03125, %v1649_v52 }
 0x7ba   : > { %v1651_v54 = vadd.f32 1e-05, %v1650_v53 }
 0x7bc   : > { %3590 = vrsqrt.f32 %v1651_v54 }
 0x7c6   : > { %v3591_v55 = vpop.eup %3590 }
 0x7c7   : > { %v1653_v57 = vmul.f32 %v3591_v55, %v1645_v39 }
 0x7c9   : > { %v1661_v59 = vmul.f32 %v3058_v56, %v1653_v57 }
 0x7cb   : > { %v4379_v60 = vadd.f32 %v3059_v58, %v1661_v59 }
 0x7cd   : > { %3249 = vmatmul.mubr.msk.f32.vlgmr.msra.gmra.mrb[12].mxu1 %vm796_vm1, %v4379_v60 }
 0x7ce   : > { %3266 = vmatprep.mubr.msk.f32.mxu1 %vm3842_vm0, %v3843_v1  ;;  %3388 = vmatpush3.bf16.xpose.msk.msra.mxu1 %vm4387_vm7, %v3386_v3 }
 0x7cf   : > { %3393 = vmatprep.subr.bf16.mxu1 %v3841_v0 }
 0x8a0   : > { %v4398_v9 = vpop.f32.mrb[12].mxu1 }
 0x8a1   : > { %2013 = vrot.lane.b32.xlu1 %v4398_v9, %s3844_s0  ;;  %v3250_v10 = vpop.f32.mrb[13].mxu1  ;;  %3267 = vmatmul.mubr.msk.f32.vlgmr.msra.gmra.mrb[14].mxu1 %vm873_vm2, %v4398_v9  ;;  %s4725_s0 = smov 16  }
 0x8a2   : > { %3396 = vmatpush3.bf16.xpose.msk.msra.mxu1 %vm4387_vm7, %v3394_v7  ;;  %3280 = vmatprep.mubr.msk.f32.mxu1 %vm3842_vm0, %v3843_v1 }
 0x8a3   : > { %3405 = vmatprep.subr.bf16.mxu1 %v3841_v0 }
 0x913   : > { %v2014_v11 = vpop.permute.xlu1 %2013 }
 0x914   : > { %3281 = vmatmul.mubr.msk.f32.vlgmr.msra.gmra.mrb[16].mxu1 %vm873_vm2, %v2014_v11 }
 0x915   : > { %3301 = vmatprep.mubr.msk.f32.mxu1 %vm3842_vm0, %v3843_v1 }
 0x974   : > { %v1907_v19 = vpop.f32.mrb[14].mxu1 }
 0x975   : > { %v1918_v20 = vsel %vm1917_vm9, -1e+30, %v1907_v19  ;;  %v3268_v21 = vpop.f32.mrb[15].mxu1 }
 0x976   : > { %v1920_v22 = vsel %vm1919_vm10, %v1918_v20, -inf }
 0x977   : > { %1921 = vmax.xlane.f32.xlu0 %v1920_v22 }
 0x9e7   : > { %v2091_v23 = vpop.f32.mrb[16].mxu1 }
 0x9e8   : > { %v2095_v24 = vsel %vm1917_vm9, -1e+30, %v2091_v23  ;;  %v3282_v25 = vpop.f32.mrb[17].mxu1 }
 0x9e9   : > { %v2096_v26 = vsel %vm1919_vm10, %v2095_v24, -inf }
 0x9ea   : > { %2097 = vmax.xlane.f32.xlu1 %v2096_v26 }
 0x9fb   : > { %3545 = vrot.lane.b32.xlu1 %v4391_v2, %s3845_s24  ;;  %s4726_s24 = smov 72  }
 0x9ff   : > { %3555 = vrot.lane.b32.xlu1 %v4391_v2, %s3849_s30 }
 0xa03   : > { %2192 = vrot.lane.b32.xlu1 %v4398_v9, %s3849_s30 }
 0xa04   : > { %v1922_v27 = vpop.xlane.xlu0 %1921 }
 0xa05   : > { %v1923_v28 = vsub.f32 %v1918_v20, %v1922_v27 }
 0xa07   : > { %v1924_v29 = vmul.f32 1.442695, %v1923_v28 }
 0xa09   : > { %3592 = vpow2.f32 %v1924_v29 }
 0xa13   : > { %v3593_v30 = vpop.eup %3592 }
 0xa14   : > { %v1926_v31 = vsel %vm1919_vm10, %v3593_v30, 0.0 }
 0xa15   : > { %1927 = vadd.xlane.f32.xlu0 %v1926_v31 }
 0xa77   : > { %v2098_v32 = vpop.xlane.xlu1 %2097 }
 0xa78   : > { %v2099_v33 = vsub.f32 %v2095_v24, %v2098_v32 }
 0xa7a   : > { %v2100_v34 = vmul.f32 1.442695, %v2099_v33 }
 0xa7b   : > { %v3546_v35 = vpop.permute.xlu1 %3545 }
 0xa7c   : > { %3594 = vpow2.f32 %v2100_v34  ;;  %v3548_v36 = vunpack.i.h.bf16 %v3546_v35  ;;  %v3547_v37 = vunpack.i.l.bf16 %v3546_v35 }
 0xa7e   : > { %v3390_v39 = vpack.c.bf16 %v3548_v36, %v3547_v37 }
 0xa7f   : > { %v3556_v49 = vpop.permute.xlu1 %3555 }
 0xa80   : > { %3392 = vmatpush3.bf16.msk.msra.mxu0 %vm4430_vm13, %v3390_v39  ;;  %v3558_v51 = vunpack.i.h.bf16 %v3556_v49  ;;  %v3557_v52 = vunpack.i.l.bf16 %v3556_v49 }
 0xa81   : > { %3397 = vmatprep.subr.bf16.mxu0 %v3841_v0 }
 0xa82   : > { %v3402_v54 = vpack.c.bf16 %v3558_v51, %v3557_v52 }
 0xa83   : > { %v2193_v55 = vpop.permute.xlu1 %2192 }
 0xa86   : > { %v3595_v40 = vpop.eup %3594 }
 0xa87   : > { %v2102_v8 = vsel %vm1919_vm10, %v3595_v40, 0.0 }
 0xa88   : > { %2103 = vadd.xlane.f32.xlu0 %v2102_v8 }
 0xa9e   : > { %3550 = vrot.lane.b32.xlu0 %v4391_v2, %s3847_s20  ;;  %s4731_s20 = sld [smem:[#allocation31_spill]] }
 0xaa2   : > { %v1928_v41 = vpop.xlane.xlu0 %1927 }
 0xaa3   : > { %3596 = vrcp.f32 %v1928_v41 }
 0xaad   : > { %v3597_v42 = vpop.eup %3596 }
 0xaae   : > { %v1930_v43 = vmul.f32 %v3597_v42, %v3593_v30  ;;  %v2551_v42 = vld [vmem:[#allocation9] sm:$0xff] }
 0xab0   : > { %3274 = vmatmul.mubr.msk.f32.vlgmr.msra.gmra.mrb[10].mxu0 %vm1919_vm10, %v1930_v43 }
 0xab1   : > { %3287 = vmatprep.mubr.msk.f32.mxu0 %vm3842_vm0, %v3843_v1 }
 0xb15   : > { %v2104_v44 = vpop.xlane.xlu0 %2103 }
 0xb16   : > { %3598 = vrcp.f32 %v2104_v44  ;;  %v2553_v44 = vld [vmem:[#allocation9 + $0x10] sm:$0xff] }
 0xb19   : > { %v3551_v45 = vpop.permute.xlu0 %3550 }
 0xb1a   : > { %v3553_v46 = vunpack.i.h.bf16 %v3551_v45  ;;  %v3552_v47 = vunpack.i.l.bf16 %v3551_v45  ;;  %v2554_v45 = vld [vmem:[#allocation9 + $0x18] sm:$0xff] }
 0xb1c   : > { %v3398_v48 = vpack.c.bf16 %v3553_v46, %v3552_v47  ;;  %v3421_v46 = vpack.c.bf16 %v2554_v45, %v2553_v44  ;;  %v3091_v45 = vld [vmem:[%s4734_s2] ss:$0 sm:$0xff] }
 0xb1e   : > { %3400 = vmatpush3.bf16.msk.msra.mxu0 %vm4430_vm13, %v3398_v48 }
 0xb1f   : > { %3401 = vmatprep.subr.bf16.mxu0 %v3841_v0 }
 0xb20   : > { %v3599_v50 = vpop.eup %3598 }
 0xb21   : > { %v2106_v53 = vmul.f32 %v3599_v50, %v3595_v40  ;;  %v3083_v50 = vld [vmem:[#allocation11] ss:$0 sm:$0xff] }
 0xb23   : > { %3288 = vmatmul.mubr.msk.f32.vlgmr.msra.gmra.mrb[12].mxu0 %vm1919_vm10, %v2106_v53 }
 0xb24   : > { %3294 = vmatprep.mubr.msk.f32.mxu0 %vm3842_vm0, %v3843_v1 }
 0xb27   : > { %3404 = vmatpush3.bf16.xpose.msk.msra.mxu0 %vm4387_vm7, %v3402_v54 }
 0xb28   : > { %3413 = vmatprep.subr.bf16.mxu0 %v3841_v0 }
 0xb2e   : > { %3295 = vmatmul.mubr.msk.f32.vlgmr.msra.gmra.mrb[14].mxu0 %vm873_vm2, %v2193_v55 }
 0xb2f   : > { %3315 = vmatprep.mubr.msk.f32.mxu0 %vm3842_vm0, %v3843_v1 }
 0xb83   : > { %v2008_v56 = vpop.f32.mrb[10].mxu0 }
 0xb84   : > { %2012 = vst.msk [vmem:[#allocation2] sm:$0xff] %vm873_vm2, %v2008_v56  ;;  %v3275_v57 = vpop.f32.mrb[11].mxu0 }
 0xbf6   : > { %v2183_v58 = vpop.f32.mrb[12].mxu0 }
 0xbf7   : > { %v3289_v59 = vpop.f32.mrb[13].mxu0 }
 0xc01   : > { %v2270_v61 = vpop.f32.mrb[14].mxu0 }
 0xc02   : > { %v2274_v62 = vsel %vm1917_vm9, -1e+30, %v2270_v61  ;;  %v3296_v3 = vpop.f32.mrb[15].mxu0 }
 0xc03   : > { %v2275_v4 = vsel %vm1919_vm10, %v2274_v62, -inf }
 0xc04   : > { %2276 = vmax.xlane.f32.xlu0 %v2275_v4  ;;  %v2668_v4 = vld [vmem:[%s4626_s11 + $0x18] sm:$0xff] }
 0xc1a   : > { %3560 = vrot.lane.b32.xlu0 %v4391_v2, %s3846_s9  ;;  %s4727_s9 = smov 24  }
 0xc1e   : > { %2371 = vrot.lane.b32.xlu0 %v4398_v9, %s3850_s4 }
 0xc91   : > { %v2277_v5 = vpop.xlane.xlu0 %2276 }
 0xc92   : > { %v2278_v6 = vsub.f32 %v2274_v62, %v2277_v5  ;;  %v2666_v62 = vld [vmem:[%s4626_s11 + $0x8] sm:$0xff] }
 0xc94   : > { %v2279_v7 = vmul.f32 1.442695, %v2278_v6  ;;  %v2750_v6 = vld [vmem:[%s4728_s12] sm:$0xff] }
 0xc95   : > { %v3561_v10 = vpop.permute.xlu0 %3560 }
 0xc96   : > { %3600 = vpow2.f32 %v2279_v7  ;;  %v3563_v11 = vunpack.i.h.bf16 %v3561_v10  ;;  %v3562_v12 = vunpack.i.l.bf16 %v3561_v10  ;;  %v2751_v7 = vld [vmem:[%s4728_s12 + $0x8] sm:$0xff]  ;;  %v2752_v10 = vld [vmem:[%s4728_s12 + $0x10] sm:$0xff] }
 0xc98   : > { %v3406_v13 = vpack.c.bf16 %v3563_v11, %v3562_v12  ;;  %v3430_v11 = vpack.c.bf16 %v2751_v7, %v2750_v6  ;;  %v2753_v12 = vld [vmem:[%s4728_s12 + $0x18] sm:$0xff] }
 0xc99   : > { %v2372_v23 = vpop.permute.xlu0 %2371 }
 0xc9a   : > { %3408 = vmatpush3.bf16.msk.msra.mxu1 %vm4430_vm13, %v3406_v13  ;;  %v3433_v13 = vpack.c.bf16 %v2753_v12, %v2752_v10 }
 0xc9b   : > { %3409 = vmatprep.subr.bf16.mxu1 %v3841_v0 }
 0xca0   : > { %v3601_v14 = vpop.eup %3600 }
 0xca1   : > { %v2281_v15 = vsel %vm1919_vm10, %v3601_v14, 0.0 }
 0xca2   : > { %2282 = vadd.xlane.f32.xlu1 %v2281_v15  ;;  %v2755_v15 = vld [vmem:[%s4728_s12 + $0x28] sm:$0xff] }
 0xcb3   : > { %3565 = vrot.lane.b32.xlu1 %v4391_v2, %s3850_s4  ;;  %s2871_s4 = scalar_lea.sflag [#allocation5], %s4191_s13 }
 0xd2f   : > { %v2283_v9 = vpop.xlane.xlu1 %2282 }
 0xd30   : > { %3602 = vrcp.f32 %v2283_v9 }
 0xd33   : > { %v3566_v16 = vpop.permute.xlu1 %3565 }
 0xd34   : > { %v3568_v17 = vunpack.i.h.bf16 %v3566_v16  ;;  %v3567_v19 = vunpack.i.l.bf16 %v3566_v16 }
 0xd36   : > { %v3410_v22 = vpack.c.bf16 %v3568_v17, %v3567_v19 }
 0xd3a   : > { %v3603_v20 = vpop.eup %3602 }
 0xd3b   : > { %v2285_v21 = vmul.f32 %v3603_v20, %v3601_v14  ;;  %v2754_v14 = vld [vmem:[%s4728_s12 + $0x20] sm:$0xff] }
 0xd3c   : > { %v3436_v9 = vpack.c.bf16 %v2755_v15, %v2754_v14 }
 0xd3d   : > { %3302 = vmatmul.mubr.msk.f32.vlgmr.msra.gmra.mrb[18].mxu1 %vm1919_vm10, %v2285_v21  ;;  %v3085_v21 = vld [vmem:[%s4729_s14] ss:$0 sm:$0xff] }
 0xd3e   : > { %3412 = vmatpush3.bf16.xpose.msk.msra.mxu1 %vm4387_vm7, %v3410_v22  ;;  %3308 = vmatprep.mubr.msk.f32.mxu1 %vm3842_vm0, %v3843_v1 }
 0xd3f   : > { %3423 = vmatprep.subr.bf16.mxu1 %v3841_v0 }
 0xd45   : > { %3309 = vmatmul.mubr.msk.f32.vlgmr.msra.gmra.mrb[20].mxu1 %vm873_vm2, %v2372_v23  ;;  %v3086_v23 = vld [vmem:[%s4730_s29] ss:$0 sm:$0xff] }
 0xd46   : > { %3337 = vmatprep.mubr.msk.f32.mxu1 %vm3842_vm0, %v3843_v1 }
 0xe10   : > { %v2362_v24 = vpop.f32.mrb[18].mxu1 }
 0xe11   : > { %v3303_v25 = vpop.f32.mrb[19].mxu1 }
 0xe18   : > { %v2449_v26 = vpop.f32.mrb[20].mxu1 }
 0xe19   : > { %v2453_v27 = vsel %vm1917_vm9, -1e+30, %v2449_v26  ;;  %v3310_v28 = vpop.f32.mrb[21].mxu1  ;;  %v2757_v26 = vld [vmem:[%s4728_s12 + $0x38] sm:$0xff] }
 0xe1a   : > { %v2454_v63 = vsel %vm1919_vm10, %v2453_v27, -inf  ;;  %v3087_v28 = vld [vmem:[%s4731_s20] ss:$0 sm:$0xff]  ;;  %s4736_s20 = sld [smem:[#allocation38_spill]] }
 0xe1b   : > { %2455 = vmax.xlane.f32.xlu1 %v2454_v63 }
 0xe20   : > { %s4570_s30 = scalar_lea.hbm %s4736_s20, %s3094_s26 }
 0xe2c   : > { %2188 = vrot.lane.b32.xlu1 %v2183_v58, %s4724_s19  ;;  %s781_s19 = scalar_lea.vmem [#allocation12], %s4194_s17  ;;  %s3762_s17 = sshll.u32 %s3860_s3, 4  ;;  %s3763_s17 = int_to_ptr.vmem [resolvable:$false] %s3762_s17 }
 0xe2d   : > { %s3764_s18 = scalar_lea.vmem %s3763_s17, 256 }
 0xe30   : > { %2367 = vrot.lane.b32.xlu1 %v2362_v24, %s4725_s0  ;;  %s2884_s0 = sshll.u32 %s781_s19, 4  ;;  %s4572_s0 = int_to_ptr.vmem [resolvable:$true] %s2884_s0 }
 0xe31   : > { %p3765_p7 = scmp.lt.s32.totalorder %s4572_s0, %s3763_s17 }
 0xea8   : > { %v2456_v29 = vpop.xlane.xlu1 %2455 }
 0xea9   : > { %v2457_v30 = vsub.f32 %v2453_v27, %v2456_v29 }
 0xeab   : > { %v2458_v31 = vmul.f32 1.442695, %v2457_v30 }
 0xeac   : > { %v2189_v32 = vpop.permute.xlu1 %2188 }
 0xead   : > { %3604 = vpow2.f32 %v2458_v31  ;;  %2191 = vst.msk [vmem:[#allocation2] sm:$0xff] %vm1208_vm4, %v2189_v32  ;;  %v3089_v32 = vld [vmem:[%s4732_s28] ss:$0 sm:$0xff]  ;;  %s3758_s28 = scalar_lea.vmem %s4572_s0, 128 }
 0xeae   : > { %p3759_p10 = scmp.ne.s32.totalorder %s4572_s0, %s3758_s28  ;;  %p3766_p4 = scmp.lt.s32.totalorder %s3764_s18, %s3758_s28 }
 0xeb0   : > { %v2368_v33 = vpop.permute.xlu1 %2367  ;;  %p3760_p9 = pnand %p3759_p10, %p4737_p8  ;;  %p3767_p2 = por %p3766_p4, %p3765_p7 }
 0xeb1   : > { %2370 = vst.msk [vmem:[#allocation2] sm:$0xff] %vm1380_vm5, %v2368_v33 }
 0xeb2   : > { %p3761_p11 = pneg %p3760_p9 }
 0xeb4   : > { %p3768_p5 = pnand %p3767_p2, %p3761_p11 }
 0xeb7   : > { %v3605_v18 = vpop.eup %3604 }
 0xeb8   : > { %v2460_v34 = vsel %vm1919_vm10, %v3605_v18, 0.0 }
 0xeb9   : > { %2461 = vadd.xlane.f32.xlu0 %v2460_v34 }
 0xecf   : > { %3570 = vrot.lane.b32.xlu0 %v4391_v2, %s4726_s24  ;;  %v2552_v2 = vld [vmem:[#allocation9 + $0x8] sm:$0xff] }
 0xed0   : > { %v3418_v43 = vpack.c.bf16 %v2552_v2, %v2551_v42 }
 0xf46   : > { %v2462_v35 = vpop.xlane.xlu0 %2461 }
 0xf47   : > { %3606 = vrcp.f32 %v2462_v35 }
 0xf4a   : > { %v3571_v36 = vpop.permute.xlu0 %3570 }
 0xf4b   : > { %v3573_v37 = vunpack.i.h.bf16 %v3571_v36  ;;  %v3572_v39 = vunpack.i.l.bf16 %v3571_v36 }
 0xf4d   : > { %v3414_v40 = vpack.c.bf16 %v3573_v37, %v3572_v39 }
 0xf4f   : > { %3416 = vmatpush3.bf16.msk.msra.mxu0 %vm4430_vm13, %v3414_v40 }
 0xf50   : > { %3417 = vmatprep.subr.bf16.mxu0 %v3841_v0 }
 0xf51   : > { %v3607_v8 = vpop.eup %3606 }
 0xf52   : > { %v2464_v41 = vmul.f32 %v3607_v8, %v3605_v18 }
 0xf54   : > { %3316 = vmatmul.mubr.msk.f32.vlgmr.msra.gmra.mrb[16].mxu0 %vm1919_vm10, %v2464_v41 }
 0xf55   : > { %3326 = vmatprep.mubr.msk.f32.mxu0 %vm3842_vm0, %v3843_v1  ;;  %3419 = vmatpush3.bf16.msra.mxu0 %v3418_v43 }
 0xf56   : > { %3420 = vmatprep.subr.bf16.mxu0 %v3841_v0 }
 0xf59   : > { %3422 = vmatpush3.bf16.msra.mxu0 %v3421_v46 }
 0xf5a   : > { %3429 = vmatprep.subr.bf16.mxu0 %v3841_v0 }
0x1027   : > { %v2541_v38 = vpop.f32.mrb[16].mxu0 }
0x1028   : > { %2546 = vrot.lane.b32.xlu0 %v2541_v38, %s4727_s9  ;;  %v3317_v47 = vpop.f32.mrb[17].mxu0  ;;  %v3092_v38 = vld [vmem:[%s4735_s23] ss:$0 sm:$0xff] }
0x109a   : > { %v2547_v48 = vpop.permute.xlu0 %2546 }
0x109b   : > { %2549 = vst.msk [vmem:[#allocation2] sm:$0xff] %vm1552_vm6, %v2547_v48 }
0x10a2   : > { %v2550_v49 = vld [vmem:[#allocation2] sm:$0xff] }
0x10a3   : > { %3327 = vmatmul.mubr.msk.f32.vlgmr.msra.gmra.mrb[18].mxu0 %vm796_vm1, %v2550_v49 }
0x10a4   : > { %3356 = vmatprep.mubr.msk.f32.mxu0 %vm3842_vm0, %v3843_v1  ;;  %v2665_v1 = vld [vmem:[%s4626_s11] sm:$0xff]  ;;  %3431 = vmatpush3.bf16.msra.mxu0 %v3430_v11 }
0x10a5   : > { %v3424_v3 = vpack.c.bf16 %v2666_v62, %v2665_v1  ;;  %3432 = vmatprep.subr.bf16.mxu0 %v3841_v0 }
0x10a7   : > { %3425 = vmatpush3.bf16.msra.mxu1 %v3424_v3 }
0x10a8   : > { %3426 = vmatprep.subr.bf16.mxu1 %v3841_v0  ;;  %3434 = vmatpush3.bf16.msra.mxu0 %v3433_v13 }
0x10a9   : > { %3435 = vmatprep.subr.bf16.mxu0 %v3841_v0 }
0x10ac   : > { %3437 = vmatpush3.bf16.msra.mxu0 %v3436_v9 }
0x10ad   : > { %3438 = vmatprep.subr.bf16.mxu0 %v3841_v0  ;;  %v2756_v0 = vld [vmem:[%s4728_s12 + $0x30] sm:$0xff] }
0x10ae   : > { %v3439_v27 = vpack.c.bf16 %v2757_v26, %v2756_v0 }
0x10b0   : > { %3440 = vmatpush3.bf16.msra.mxu0 %v3439_v27 }
0x1176   : > { %v2631_v51 = vpop.f32.mrb[18].mxu0 }
0x1177   : > { %v2632_v52 = vadd.f32 %v3083_v50, %v2631_v51  ;;  %v3328_v53 = vpop.f32.mrb[19].mxu0 }
0x1179   : > { %v2635_v54 = vadd.f32 %v2632_v52, %v4379_v60  ;;  %v2667_v60 = vld [vmem:[%s4626_s11 + $0x10] sm:$0xff] }
0x117a   : > { %v3427_v5 = vpack.c.bf16 %v2668_v4, %v2667_v60 }
0x117b   : > { %v2636_v55 = vsel %vm796_vm1, %v2635_v54, 0.0 }
0x117c   : > { %2637 = vadd.xlane.f32.xlu1 %v2636_v55  ;;  %3428 = vmatpush3.bf16.msra.mxu1 %v3427_v5 }
0x1209   : > { %v2638_v56 = vpop.xlane.xlu1 %2637 }
0x120a   : > { %v2639_v57 = vmul.f32 0.03125, %v2638_v56 }
0x120c   : > { %v2640_v58 = vsub.f32 %v2635_v54, %v2639_v57 }
0x120e   : > { %v2641_v59 = vmul.f32 %v2640_v58, %v2640_v58 }
0x1210   : > { %v2642_v61 = vsel %vm796_vm1, %v2641_v59, 0.0 }
0x1211   : > { %2643 = vadd.xlane.f32.xlu0 %v2642_v61 }
0x129e   : > { %v2644_v16 = vpop.xlane.xlu0 %2643 }
0x129f   : > { %v2645_v17 = vmul.f32 0.03125, %v2644_v16 }
0x12a1   : > { %v2646_v19 = vadd.f32 1e-05, %v2645_v17 }
0x12a3   : > { %3608 = vrsqrt.f32 %v2646_v19 }
0x12ad   : > { %v3609_v20 = vpop.eup %3608 }
0x12ae   : > { %v2648_v22 = vmul.f32 %v3609_v20, %v2640_v58 }
0x12b0   : > { %v2656_v24 = vmul.f32 %v3085_v21, %v2648_v22 }
0x12b2   : > { %v2664_v25 = vadd.f32 %v3086_v23, %v2656_v24 }
0x12b4   : > { %3338 = vmatmul.mubr.msk.f32.vlgmr.msra.gmra.mrb[22].mxu1 %vm796_vm1, %v2664_v25 }
0x1387   : > { %v2745_v63 = vpop.f32.mrb[22].mxu1 }
0x1388   : > { %v2746_v29 = vadd.f32 %v3087_v28, %v2745_v63  ;;  %v3339_v30 = vpop.f32.mrb[23].mxu1 }
0x138a   : > { %v2749_v31 = vmax.f32 %v2746_v29, 0.0 }
0x138c   : > { %3357 = vmatmul.mubr.msk.f32.vlgmr.msra.gmra.mrb[20].mxu0 %vm2765_vm14, %v2749_v31 }
0x145f   : > { %v2835_v33 = vpop.f32.mrb[20].mxu0 }
0x1460   : > { %v2836_v18 = vadd.f32 %v3089_v32, %v2835_v33  ;;  %v3358_v34 = vpop.f32.mrb[21].mxu0 }
0x1462   : > { %v2839_v35 = vadd.f32 %v2836_v18, %v2664_v25 }
0x1464   : > { %v2840_v36 = vsel %vm796_vm1, %v2839_v35, 0.0 }
0x1465   : > { %2841 = vadd.xlane.f32.xlu0 %v2840_v36 }
0x14f2   : > { %v2842_v37 = vpop.xlane.xlu0 %2841 }
0x14f3   : > { %v2843_v39 = vmul.f32 0.03125, %v2842_v37 }
0x14f5   : > { %v2844_v40 = vsub.f32 %v2839_v35, %v2843_v39 }
0x14f7   : > { %v2845_v8 = vmul.f32 %v2844_v40, %v2844_v40 }
0x14f9   : > { %v2846_v41 = vsel %vm796_vm1, %v2845_v8, 0.0 }
0x14fa   : > { %2847 = vadd.xlane.f32.xlu1 %v2846_v41 }
0x1587   : > { %v2848_v42 = vpop.xlane.xlu1 %2847 }
0x1588   : > { %v2849_v2 = vmul.f32 0.03125, %v2848_v42 }
0x158a   : > { %v2850_v43 = vadd.f32 1e-05, %v2849_v2 }
0x158c   : > { %3610 = vrsqrt.f32 %v2850_v43 }
0x1596   : > { %v3611_v44 = vpop.eup %3610 }
0x1597   : > { %v2852_v46 = vmul.f32 %v3611_v44, %v2844_v40 }
0x1599   : > { %v2860_v47 = vmul.f32 %v3091_v45, %v2852_v46 }
0x159b   : > { %v2868_v48 = vadd.f32 %v3092_v38, %v2860_v47 }
0x159d   : > { %2869 = vst.msk [vmem:[%s781_s19] sm:$0xff] %vm796_vm1, %v2868_v48 }
0x159e   : > { %3771 = shalt.err (!%p3768_p5)
}
0x159f   : > { %s3772_s13 = scalar_lea.hbm %s4570_s30, 128  ;;  %s3776_s1 = scalar_lea.hbm %s4736_s20, 256 }
0x15a0   : > { %p3773_p12 = scmp.ne.s32.totalorder %s4570_s30, %s3772_s13  ;;  %p3777_p13 = scmp.lt.u32.totalorder %s4570_s30, %s4736_s20 }
0x15a1   : > { %p3778_p1 = scmp.lt.u32.totalorder %s3776_s1, %s3772_s13  ;;  %p3780_p10 = scmp.lt.u32.totalorder %s3772_s13, %s4570_s30 }
0x15a2   : > { %p3774_p3 = pnand %p3773_p12, %p4737_p8 }
0x15a3   : > { %p3779_p6 = por %p3778_p1, %p3777_p13 }
0x15a4   : > { %p3775_p0 = pneg %p3774_p3 }
0x15a5   : > { %p3781_p9 = por %p3780_p10, %p3779_p6 }
0x15a7   : > { %p3782_p11 = pnand %p3781_p9, %p3775_p0 }
0x15a9   : > { %3785 = shalt.err (!%p3782_p11)
}
0x15aa   : > { %3455 = dma.vmem_to_hbm [thread:$0]  (%p4737_p8), %s4572_s0, 128, %s4570_s30, %s2871_s4  }
0x15ab PF: > { %s4738_s26 = sld [smem:[#allocation17_spill]]  ;;  %s4739_s19 = sld [smem:[#allocation19_spill]] }
0x15ac   : > { %p4741_p4 = scmp.ge.s32.totalorder %s3832_s27, 2 }
0x15b1   : > { %s2896_s24 = sand.u32 1, %s4738_s26   ;;  %p4740_p7 = scmp.ne.s32.totalorder %s4739_s19, 0 }
0x15b2   : > { %s2897_s9 = scalar_lea.sflag [#allocation5], %s2896_s24 }
0x15b3   : > { %p3475_p2 = pnand %p4741_p4, %p4740_p7 }
0x15b5   : > { %3815 = dma.done.wait (!%p3475_p2), %s2897_s9, 128  }
0x15b6   : > { %3817 = vsyncadd (!%p3475_p2), %s2897_s9, 4294967168  ;;  %s4742_s27 = sld [smem:[#allocation20_spill]]  ;;  %s4743_s28 = sld [smem:[#allocation18_spill]] }
0x15b7   : > { %s4744_s26 = sld [smem:[#allocation21_spill]]  ;;  %s4745_s2 = smov %s3824_s25 }
0x15bc   : > { %p38_p5 = scmp.ge.s32.totalorder %s4742_s27, 4   ;;  %s4746_s25 = smov %s4743_s28 }
0x15be   :  { %40 = sbr.rel (!%p38_p5) target bundleno = 25 (0x19), region = 184 }
0x15c5   :  { %2902 = vsyncpa [#allocation4], 1 }
0x15c6   :  { %2904 = vsyncpa [#allocation4 + $0x1], 1 }
0x15c7   :  { %2905 = vsyncpa [#allocation7], 1 }
0x15c8   :  { %2907 = vsyncpa [#allocation7 + $0x1], 1 }
0x15c9   :  { %2908 = vsyncpa [#allocation10], 1 }
0x15ca   :  { %2909 = vsyncpa [#allocation5], 1 }
0x15cb   :  { %2911 = vsyncpa [#allocation5 + $0x1], 1 }

</bundles_post_ra>
